<compile_context>
chip_gen: v5e
topology: v5e:2x2
jax: 0.10.0
libtpu: 0.0.40
codegen_flags: <defaults>
</compile_context>

<pallas_src>
import math
from functools import partial

import jax
import jax.numpy as jnp
from jax.experimental import pallas as pl
from jax.experimental.pallas import tpu as pltpu


def _round_up(x, m):
    return ((x + m - 1) // m) * m


def fused_conv_stack_kernel(tok_ref, emb_ref, w_ref, scale_ref, bias_ref, o_ref,
                            h_scr, *, T, Tp, lead, pad, Bblk, L, K):
    """Embedding gather + (Conv1d -> folded BN -> ReLU) x L, fully fused.

    tok_ref:   (B, T)        int32  SMEM (scalar prefetch)
    emb_ref:   (n_sym, Cp)   f32    embedding table (padded channels are zero)
    w_ref:     (L, K*Cp, Cp) bf16   im2col-packed conv weights (tap-major rows)
    scale_ref: (L, 1, Cp)    f32    gamma / sqrt(running_var + eps)
    bias_ref:  (L, 1, Cp)    f32    beta + scale * (conv_bias - running_mean)
    o_ref:     (Bblk, T, Cp) f32
    h_scr:     (Nslab, Cp)   f32    shared activation slab for the Bblk elements.

    Slab layout (per grid step):
      rows [0, lead)                           : permanent zeros ('same' left pad)
      rows [lead + b*Tp, lead + b*Tp + T)      : element b activations (valid rows)
      rows [lead + b*Tp + T, lead + (b+1)*Tp)  : permanent zeros (right pad / separator)
      rows [lead + Bblk*Tp, Nslab)             : permanent zeros (slice overrun)
    INVARIANT: after the one-time zero init only the valid rows are ever written,
    so every halo row stays exactly zero across layers and grid steps.
    """
    Cp = emb_ref.shape[1]
    M = Bblk * Tp                 # matmul M dimension (valid rows + halo rows)
    s0 = lead - pad               # window slice origin for tap k = 0

    # One-time zero init of the slab (halo rows are never dirtied afterwards).
    @pl.when(pl.program_id(0) == 0)
    def _init():
        h_scr[...] = jnp.zeros_like(h_scr)

    # --- In-kernel embedding gather (tokens live in SMEM via scalar prefetch). ---
    g = pl.program_id(0)
    for b in range(Bblk):                       # static unroll (Bblk, T small)
        base = lead + b * Tp
        for t in range(T):
            tok = tok_ref[g * Bblk + b, t]                       # scalar SMEM read
            h_scr[pl.ds(base + t, 1), :] = emb_ref[pl.ds(tok, 1), :]
    # TODO(synk): for long sequences replace this unrolled per-row gather with a
    # vectorized / DMA-based gather.

    # --- (Conv1d -> folded BN -> ReLU) x L, one MXU dot per layer. ---
    for l in range(L):                          # static unroll over conv layers
        h = h_scr[...]                          # one aligned full-slab load
        # im2col: K shifted row-windows concatenated along lanes -> (M, K*Cp) bf16.
        # Window k row r maps to slab row lead + r + (k - pad); out-of-range taps
        # land in the zero halo rows == exact 'same' zero padding.
        im2col = jnp.concatenate(
            [h[s0 + k:s0 + k + M, :].astype(jnp.bfloat16) for k in range(K)],
            axis=1,
        )
        y = jnp.dot(im2col, w_ref[l], preferred_element_type=jnp.float32)  # (M, Cp)
        # Folded BatchNorm (+ conv bias) and ReLU, kept in f32 (no bf16 VPU on v5e).
        y = jnp.maximum(y * scale_ref[l] + bias_ref[l], 0.0)
        # Rows in the halo positions of y are garbage-free but meaningless; they are
        # simply never stored, which keeps the zero-halo invariant intact.
        if l + 1 < L:
            for b in range(Bblk):               # aligned stores of valid rows only
                h_scr[pl.ds(lead + b * Tp, T), :] = y[b * Tp:b * Tp + T, :]
        else:
            for b in range(Bblk):
                o_ref[b] = y[b * Tp:b * Tp + T, :].astype(o_ref.dtype)
        # TODO(synk): for realistic Tacotron sizes (C=512, long T) tile the M rows
        # (fori_loop over ~256-row chunks) so im2col / y stay inside the vreg file.


def _pick_batch_block(B, T, target_rows=256):
    """Largest divisor of B whose folded M = d*T stays near the MXU row width.

    On v7x one may want to cap this at B//2 so both TensorCores get a grid step;
    here we prioritize MXU row utilization (target "all" generations).
    """
    best = 1
    for d in range(1, B + 1):
        if B % d == 0 and d * T <= target_rows:
            best = d
    return best


def fused_conv_stack(tokens, emb_p, w_all, scale_all, bias_all, batch_block=None):
    """tokens: (B, T) int32 -> (B, T, Cp) f32, running embedding + all L conv layers."""
    B, T = tokens.shape
    n_sym, Cp = emb_p.shape
    L = scale_all.shape[0]
    KCp = w_all.shape[1]
    K = KCp // Cp
    pad = (K - 1) // 2

    Bblk = batch_block if batch_block is not None else _pick_batch_block(B, T)
    assert B % Bblk == 0
    G = B // Bblk

    lead = 8                                  # leading zero rows (sublane aligned)
    assert pad <= lead, "kernel_size too large for the fixed 8-row lead halo"
    Tp = _round_up(T + 2 * pad, 8)            # per-element stride inside the slab
    M = Bblk * Tp
    Nslab = _round_up(lead + M + pad, 8)      # window slices reach lead + M + pad

    kernel = partial(fused_conv_stack_kernel,
                     T=T, Tp=Tp, lead=lead, pad=pad, Bblk=Bblk, L=L, K=K)

    return pl.pallas_call(
        kernel,
        out_shape=jax.ShapeDtypeStruct((B, T, Cp), jnp.float32),
        grid_spec=pltpu.PrefetchScalarGridSpec(
            num_scalar_prefetch=1,            # tokens -> SMEM before the grid runs
            grid=(G,),
            in_specs=[
                # Grid-invariant parameter blocks (full arrays, constant index_map).
                pl.BlockSpec((n_sym, Cp), lambda g, tok: (0, 0)),
                pl.BlockSpec((L, KCp, Cp), lambda g, tok: (0, 0, 0)),
                pl.BlockSpec((L, 1, Cp), lambda g, tok: (0, 0, 0)),
                pl.BlockSpec((L, 1, Cp), lambda g, tok: (0, 0, 0)),
            ],
            out_specs=pl.BlockSpec((Bblk, T, Cp), lambda g, tok: (g, 0, 0)),
            scratch_shapes=[pltpu.VMEM((Nslab, Cp), jnp.float32)],
        ),
        compiler_params=pltpu.CompilerParams(
            # Batch-group axis is independent -> megacore shards it on v7x.
            dimension_semantics=("parallel",),
            # Explicit budget: above v5e/v6e scoped defaults, below v7x 64 MiB/core.
            # Re-derive at realistic C/T (and single-buffer the grid-invariant
            # weight block) before scaling to full Tacotron sizes on v7x.
            vmem_limit_bytes=48 * 1024 * 1024,
        ),
    )(tokens, emb_p, w_all, scale_all, bias_all)


def init_params(key, config):
    """Deterministic parameter init matching the PyTorch module's __init__."""
    n_sym = config["n_symbols"]
    emb_dim = config["symbols_embedding_dim"]
    enc_dim = config["encoder_embedding_dim"]
    K = config["encoder_kernel_size"]
    n_conv = config["encoder_n_convolutions"]

    keys = jax.random.split(key, 1 + 2 * n_conv)

    # Embedding: uniform(-val, val), val = sqrt(3) * sqrt(2 / (n_sym + emb_dim))
    std = math.sqrt(2.0 / (n_sym + emb_dim))
    val = math.sqrt(3.0) * std
    emb = jax.random.uniform(keys[0], (n_sym, emb_dim), jnp.float32, -val, val)

    layers = []
    for i in range(n_conv):
        # ConvNorm: xavier_uniform_ with gain('relu') = sqrt(2).
        fan_in, fan_out = enc_dim * K, enc_dim * K
        limit = math.sqrt(2.0) * math.sqrt(6.0 / (fan_in + fan_out))
        # Stored as (K, C_in, C_out). NOTE: PyTorch Conv1d weight is
        # (C_out, C_in, K); loading a real checkpoint requires w_pt.transpose(2, 1, 0).
        w = jax.random.uniform(
            keys[1 + 2 * i], (K, enc_dim, enc_dim), jnp.float32, -limit, limit
        )
        conv_bias = jax.random.uniform(
            keys[2 + 2 * i], (enc_dim,), jnp.float32,
            -1.0 / math.sqrt(fan_in), 1.0 / math.sqrt(fan_in)
        )
        # BatchNorm1d eval-mode params / running stats (fresh-module values).
        gamma = jnp.ones((enc_dim,), jnp.float32)
        beta = jnp.zeros((enc_dim,), jnp.float32)
        running_mean = jnp.zeros((enc_dim,), jnp.float32)
        running_var = jnp.ones((enc_dim,), jnp.float32)
        eps = 1e-5
        # Fold BN (+ conv bias) into per-channel scale / bias:
        #   y = gamma * (conv + b - mean) / sqrt(var + eps) + beta
        scale = gamma / jnp.sqrt(running_var + eps)
        bias = beta + scale * (conv_bias - running_mean)
        layers.append((w, scale, bias))

    return emb, layers


def pack_params(emb, layers, lane=128):
    """Pad channels to 128 lanes, im2col-pack the conv weights, cast them to bf16."""
    C = emb.shape[1]
    Cp = ((C + lane - 1) // lane) * lane
    cpad = Cp - C
    L = len(layers)
    K = layers[0][0].shape[0]

    emb_p = jnp.pad(emb, ((0, 0), (0, cpad)))                       # (n_sym, Cp) f32

    w_all = jnp.stack([w for (w, _, _) in layers])                  # (L, K, C, C)
    w_all = jnp.pad(w_all, ((0, 0), (0, 0), (0, cpad), (0, cpad)))  # (L, K, Cp, Cp)
    # im2col packing: row index k*Cp + c_in matches the lane-concat window order.
    w_all = w_all.reshape(L, K * Cp, Cp).astype(jnp.bfloat16)

    scale_all = jnp.stack([s for (_, s, _) in layers])              # (L, C)
    scale_all = jnp.pad(scale_all, ((0, 0), (0, cpad)),
                        constant_values=1.0).reshape(L, 1, Cp)
    bias_all = jnp.stack([b for (_, _, b) in layers])
    bias_all = jnp.pad(bias_all, ((0, 0), (0, cpad))).reshape(L, 1, Cp)

    return emb_p, w_all, scale_all, bias_all, C


def conv_module_forward(tokens, emb_p, w_all, scale_all, bias_all, out_channels):
    """tokens: (B, T) int32 -> (B, C, T) float32 (matches PyTorch output layout)."""
    # Embedding gather + all L conv layers run inside one pallas_call.
    # TODO(synk): training-mode dropout(0.5) omitted -- module runs in eval mode
    # where F.dropout is the identity.
    y = fused_conv_stack(tokens, emb_p, w_all, scale_all, bias_all)   # (B, T, Cp)
    y = y[:, :, :out_channels]                                        # drop lane padding
    return jnp.transpose(y, (0, 2, 1))                                # back to NCT


def reference_forward(tokens, emb_p, w_all, scale_all, bias_all, out_channels):
    """Pure-JAX f32 reference (same packed bf16 weights) for correctness check."""
    L = scale_all.shape[0]
    Cp = scale_all.shape[2]
    K = w_all.shape[1] // Cp
    pad = (K - 1) // 2
    w = w_all.astype(jnp.float32).reshape(L, K, Cp, Cp)
    h = jnp.take(emb_p, tokens, axis=0)                    # (B, T, Cp)
    T = h.shape[1]
    for l in range(L):
        hp = jnp.pad(h, ((0, 0), (pad, pad), (0, 0)))
        acc = jnp.zeros_like(h)
        for k in range(K):
            acc = acc + jnp.einsum("btc,cd->btd", hp[:, k:k + T, :], w[l, k])
        h = jnp.maximum(acc * scale_all[l] + bias_all[l], 0.0)
    return jnp.transpose(h[:, :, :out_channels], (0, 2, 1))


if __name__ == "__main__":
    config = {
        "n_symbols": 64,
        "symbols_embedding_dim": 32,
        "encoder_embedding_dim": 32,
        "encoder_n_convolutions": 3,
        "encoder_kernel_size": 5,
    }
    B, T = 2, 16

    key = jax.random.PRNGKey(0)
    k_tok, k_par = jax.random.split(key)
    tokens = jax.random.randint(k_tok, (B, T), 0, config["n_symbols"], jnp.int32)

    emb, layers = init_params(k_par, config)
    emb_p, w_all, scale_all, bias_all, C = pack_params(emb, layers)

    fwd = jax.jit(partial(conv_module_forward, emb_p=emb_p, w_all=w_all,
                          scale_all=scale_all, bias_all=bias_all, out_channels=C))
    out = jax.block_until_ready(fwd(tokens))

    assert out.shape == (B, C, T), out.shape
    assert out.dtype == jnp.float32
    assert bool(jnp.all(jnp.isfinite(out)))

    # Correctness vs pure-JAX reference (bf16 matmul operands -> loose tolerance).
    ref = reference_forward(tokens, emb_p, w_all, scale_all, bias_all, C)
    assert bool(jnp.allclose(out, ref, rtol=5e-2, atol=5e-2)), \
        float(jnp.max(jnp.abs(out - ref)))

    print("KERNEL_OK")
</pallas_src>

<mosaic_0001>
module attributes {stable_mosaic.version = 11 : i64} {
  func.func @fused_conv_stack_kernel(%arg0: i32, %arg1: memref<2x16xi32, #tpu.memory_space<smem>>, %arg2: memref<64x128xf32, #tpu.memory_space<vmem>>, %arg3: memref<3x640x128xbf16, #tpu.memory_space<vmem>>, %arg4: memref<3x1x128xf32, #tpu.memory_space<vmem>>, %arg5: memref<3x1x128xf32, #tpu.memory_space<vmem>>, %arg6: memref<2x16x128xf32, #tpu.memory_space<vmem>>, %arg7: memref<64x128xf32, #tpu.memory_space<vmem>>) attributes {dimension_semantics = [#tpu.dimension_semantics<parallel>], iteration_bounds = array<i64: 1>, scalar_prefetch = 1 : i64, scratch_operands = 1 : i64, tpu.core_type = #tpu.core_type<tc>, window_params = [{pipeline_mode = #tpu.pipeline_mode<synchronous>, transform_indices = @transform_0, window_bounds = array<i64: 64, 128>}, {pipeline_mode = #tpu.pipeline_mode<synchronous>, transform_indices = @transform_1, window_bounds = array<i64: 3, 640, 128>}, {pipeline_mode = #tpu.pipeline_mode<synchronous>, transform_indices = @transform_2, window_bounds = array<i64: 3, 1, 128>}, {pipeline_mode = #tpu.pipeline_mode<synchronous>, transform_indices = @transform_3, window_bounds = array<i64: 3, 1, 128>}, {transform_indices = @transform_4, window_bounds = array<i64: 2, 16, 128>}]} {
    %c0_i32 = arith.constant 0 : i32
    %0 = arith.cmpi eq, %arg0, %c0_i32 : i32
    %1 = arith.extui %0 : i1 to i32
    %c0_i32_0 = arith.constant 0 : i32
    %2 = arith.cmpi ne, %1, %c0_i32_0 : i32
    scf.if %2 {
      %cst_203 = arith.constant 0.000000e+00 : f32
      %318 = vector.broadcast %cst_203 : f32 to vector<64x128xf32>
      %c0_204 = arith.constant 0 : index
      %c0_205 = arith.constant 0 : index
      %319 = vector.load %arg7[%c0_204, %c0_205] : memref<64x128xf32, #tpu.memory_space<vmem>>, vector<64x128xf32>
      tpu.vector_store %arg7[%c0_204, %c0_205], %318 {strides = array<i32>} : memref<64x128xf32, #tpu.memory_space<vmem>>, vector<64x128xf32>,
    } else {
    }
    %c2_i32 = arith.constant 2 : i32
    %3 = arith.muli %arg0, %c2_i32 : i32
    %c0_i32_1 = arith.constant 0 : i32
    %4 = arith.addi %3, %c0_i32_1 : i32
    %5 = arith.index_cast %4 : i32 to index
    %c0 = arith.constant 0 : index
    %6 = memref.load %arg1[%5, %c0] : memref<2x16xi32, #tpu.memory_space<smem>>
    %7 = arith.index_cast %6 : i32 to index
    %c0_2 = arith.constant 0 : index
    %8 = vector.load %arg2[%7, %c0_2] : memref<64x128xf32, #tpu.memory_space<vmem>>, vector<1x128xf32>
    %c8 = arith.constant 8 : index
    %c0_3 = arith.constant 0 : index
    %9 = vector.load %arg7[%c8, %c0_3] : memref<64x128xf32, #tpu.memory_space<vmem>>, vector<1x128xf32>
    tpu.vector_store %arg7[%c8, %c0_3], %8 {strides = array<i32>} : memref<64x128xf32, #tpu.memory_space<vmem>>, vector<1x128xf32>,
    %c2_i32_4 = arith.constant 2 : i32
    %10 = arith.muli %arg0, %c2_i32_4 : i32
    %c0_i32_5 = arith.constant 0 : i32
    %11 = arith.addi %10, %c0_i32_5 : i32
    %12 = arith.index_cast %11 : i32 to index
    %c1 = arith.constant 1 : index
    %13 = memref.load %arg1[%12, %c1] : memref<2x16xi32, #tpu.memory_space<smem>>
    %14 = arith.index_cast %13 : i32 to index
    %c0_6 = arith.constant 0 : index
    %15 = vector.load %arg2[%14, %c0_6] : memref<64x128xf32, #tpu.memory_space<vmem>>, vector<1x128xf32>
    %c9 = arith.constant 9 : index
    %c0_7 = arith.constant 0 : index
    %16 = vector.load %arg7[%c9, %c0_7] : memref<64x128xf32, #tpu.memory_space<vmem>>, vector<1x128xf32>
    tpu.vector_store %arg7[%c9, %c0_7], %15 {strides = array<i32>} : memref<64x128xf32, #tpu.memory_space<vmem>>, vector<1x128xf32>,
    %c2_i32_8 = arith.constant 2 : i32
    %17 = arith.muli %arg0, %c2_i32_8 : i32
    %c0_i32_9 = arith.constant 0 : i32
    %18 = arith.addi %17, %c0_i32_9 : i32
    %19 = arith.index_cast %18 : i32 to index
    %c2 = arith.constant 2 : index
    %20 = memref.load %arg1[%19, %c2] : memref<2x16xi32, #tpu.memory_space<smem>>
    %21 = arith.index_cast %20 : i32 to index
    %c0_10 = arith.constant 0 : index
    %22 = vector.load %arg2[%21, %c0_10] : memref<64x128xf32, #tpu.memory_space<vmem>>, vector<1x128xf32>
    %c10 = arith.constant 10 : index
    %c0_11 = arith.constant 0 : index
    %23 = vector.load %arg7[%c10, %c0_11] : memref<64x128xf32, #tpu.memory_space<vmem>>, vector<1x128xf32>
    tpu.vector_store %arg7[%c10, %c0_11], %22 {strides = array<i32>} : memref<64x128xf32, #tpu.memory_space<vmem>>, vector<1x128xf32>,
    %c2_i32_12 = arith.constant 2 : i32
    %24 = arith.muli %arg0, %c2_i32_12 : i32
    %c0_i32_13 = arith.constant 0 : i32
    %25 = arith.addi %24, %c0_i32_13 : i32
    %26 = arith.index_cast %25 : i32 to index
    %c3 = arith.constant 3 : index
    %27 = memref.load %arg1[%26, %c3] : memref<2x16xi32, #tpu.memory_space<smem>>
    %28 = arith.index_cast %27 : i32 to index
    %c0_14 = arith.constant 0 : index
    %29 = vector.load %arg2[%28, %c0_14] : memref<64x128xf32, #tpu.memory_space<vmem>>, vector<1x128xf32>
    %c11 = arith.constant 11 : index
    %c0_15 = arith.constant 0 : index
    %30 = vector.load %arg7[%c11, %c0_15] : memref<64x128xf32, #tpu.memory_space<vmem>>, vector<1x128xf32>
    tpu.vector_store %arg7[%c11, %c0_15], %29 {strides = array<i32>} : memref<64x128xf32, #tpu.memory_space<vmem>>, vector<1x128xf32>,
    %c2_i32_16 = arith.constant 2 : i32
    %31 = arith.muli %arg0, %c2_i32_16 : i32
    %c0_i32_17 = arith.constant 0 : i32
    %32 = arith.addi %31, %c0_i32_17 : i32
    %33 = arith.index_cast %32 : i32 to index
    %c4 = arith.constant 4 : index
    %34 = memref.load %arg1[%33, %c4] : memref<2x16xi32, #tpu.memory_space<smem>>
    %35 = arith.index_cast %34 : i32 to index
    %c0_18 = arith.constant 0 : index
    %36 = vector.load %arg2[%35, %c0_18] : memref<64x128xf32, #tpu.memory_space<vmem>>, vector<1x128xf32>
    %c12 = arith.constant 12 : index
    %c0_19 = arith.constant 0 : index
    %37 = vector.load %arg7[%c12, %c0_19] : memref<64x128xf32, #tpu.memory_space<vmem>>, vector<1x128xf32>
    tpu.vector_store %arg7[%c12, %c0_19], %36 {strides = array<i32>} : memref<64x128xf32, #tpu.memory_space<vmem>>, vector<1x128xf32>,
    %c2_i32_20 = arith.constant 2 : i32
    %38 = arith.muli %arg0, %c2_i32_20 : i32
    %c0_i32_21 = arith.constant 0 : i32
    %39 = arith.addi %38, %c0_i32_21 : i32
    %40 = arith.index_cast %39 : i32 to index
    %c5 = arith.constant 5 : index
    %41 = memref.load %arg1[%40, %c5] : memref<2x16xi32, #tpu.memory_space<smem>>
    %42 = arith.index_cast %41 : i32 to index
    %c0_22 = arith.constant 0 : index
    %43 = vector.load %arg2[%42, %c0_22] : memref<64x128xf32, #tpu.memory_space<vmem>>, vector<1x128xf32>
    %c13 = arith.constant 13 : index
    %c0_23 = arith.constant 0 : index
    %44 = vector.load %arg7[%c13, %c0_23] : memref<64x128xf32, #tpu.memory_space<vmem>>, vector<1x128xf32>
    tpu.vector_store %arg7[%c13, %c0_23], %43 {strides = array<i32>} : memref<64x128xf32, #tpu.memory_space<vmem>>, vector<1x128xf32>,
    %c2_i32_24 = arith.constant 2 : i32
    %45 = arith.muli %arg0, %c2_i32_24 : i32
    %c0_i32_25 = arith.constant 0 : i32
    %46 = arith.addi %45, %c0_i32_25 : i32
    %47 = arith.index_cast %46 : i32 to index
    %c6 = arith.constant 6 : index
    %48 = memref.load %arg1[%47, %c6] : memref<2x16xi32, #tpu.memory_space<smem>>
    %49 = arith.index_cast %48 : i32 to index
    %c0_26 = arith.constant 0 : index
    %50 = vector.load %arg2[%49, %c0_26] : memref<64x128xf32, #tpu.memory_space<vmem>>, vector<1x128xf32>
    %c14 = arith.constant 14 : index
    %c0_27 = arith.constant 0 : index
    %51 = vector.load %arg7[%c14, %c0_27] : memref<64x128xf32, #tpu.memory_space<vmem>>, vector<1x128xf32>
    tpu.vector_store %arg7[%c14, %c0_27], %50 {strides = array<i32>} : memref<64x128xf32, #tpu.memory_space<vmem>>, vector<1x128xf32>,
    %c2_i32_28 = arith.constant 2 : i32
    %52 = arith.muli %arg0, %c2_i32_28 : i32
    %c0_i32_29 = arith.constant 0 : i32
    %53 = arith.addi %52, %c0_i32_29 : i32
    %54 = arith.index_cast %53 : i32 to index
    %c7 = arith.constant 7 : index
    %55 = memref.load %arg1[%54, %c7] : memref<2x16xi32, #tpu.memory_space<smem>>
    %56 = arith.index_cast %55 : i32 to index
    %c0_30 = arith.constant 0 : index
    %57 = vector.load %arg2[%56, %c0_30] : memref<64x128xf32, #tpu.memory_space<vmem>>, vector<1x128xf32>
    %c15 = arith.constant 15 : index
    %c0_31 = arith.constant 0 : index
    %58 = vector.load %arg7[%c15, %c0_31] : memref<64x128xf32, #tpu.memory_space<vmem>>, vector<1x128xf32>
    tpu.vector_store %arg7[%c15, %c0_31], %57 {strides = array<i32>} : memref<64x128xf32, #tpu.memory_space<vmem>>, vector<1x128xf32>,
    %c2_i32_32 = arith.constant 2 : i32
    %59 = arith.muli %arg0, %c2_i32_32 : i32
    %c0_i32_33 = arith.constant 0 : i32
    %60 = arith.addi %59, %c0_i32_33 : i32
    %61 = arith.index_cast %60 : i32 to index
    %c8_34 = arith.constant 8 : index
    %62 = memref.load %arg1[%61, %c8_34] : memref<2x16xi32, #tpu.memory_space<smem>>
    %63 = arith.index_cast %62 : i32 to index
    %c0_35 = arith.constant 0 : index
    %64 = vector.load %arg2[%63, %c0_35] : memref<64x128xf32, #tpu.memory_space<vmem>>, vector<1x128xf32>
    %c16 = arith.constant 16 : index
    %c0_36 = arith.constant 0 : index
    %65 = vector.load %arg7[%c16, %c0_36] : memref<64x128xf32, #tpu.memory_space<vmem>>, vector<1x128xf32>
    tpu.vector_store %arg7[%c16, %c0_36], %64 {strides = array<i32>} : memref<64x128xf32, #tpu.memory_space<vmem>>, vector<1x128xf32>,
    %c2_i32_37 = arith.constant 2 : i32
    %66 = arith.muli %arg0, %c2_i32_37 : i32
    %c0_i32_38 = arith.constant 0 : i32
    %67 = arith.addi %66, %c0_i32_38 : i32
    %68 = arith.index_cast %67 : i32 to index
    %c9_39 = arith.constant 9 : index
    %69 = memref.load %arg1[%68, %c9_39] : memref<2x16xi32, #tpu.memory_space<smem>>
    %70 = arith.index_cast %69 : i32 to index
    %c0_40 = arith.constant 0 : index
    %71 = vector.load %arg2[%70, %c0_40] : memref<64x128xf32, #tpu.memory_space<vmem>>, vector<1x128xf32>
    %c17 = arith.constant 17 : index
    %c0_41 = arith.constant 0 : index
    %72 = vector.load %arg7[%c17, %c0_41] : memref<64x128xf32, #tpu.memory_space<vmem>>, vector<1x128xf32>
    tpu.vector_store %arg7[%c17, %c0_41], %71 {strides = array<i32>} : memref<64x128xf32, #tpu.memory_space<vmem>>, vector<1x128xf32>,
    %c2_i32_42 = arith.constant 2 : i32
    %73 = arith.muli %arg0, %c2_i32_42 : i32
    %c0_i32_43 = arith.constant 0 : i32
    %74 = arith.addi %73, %c0_i32_43 : i32
    %75 = arith.index_cast %74 : i32 to index
    %c10_44 = arith.constant 10 : index
    %76 = memref.load %arg1[%75, %c10_44] : memref<2x16xi32, #tpu.memory_space<smem>>
    %77 = arith.index_cast %76 : i32 to index
    %c0_45 = arith.constant 0 : index
    %78 = vector.load %arg2[%77, %c0_45] : memref<64x128xf32, #tpu.memory_space<vmem>>, vector<1x128xf32>
    %c18 = arith.constant 18 : index
    %c0_46 = arith.constant 0 : index
    %79 = vector.load %arg7[%c18, %c0_46] : memref<64x128xf32, #tpu.memory_space<vmem>>, vector<1x128xf32>
    tpu.vector_store %arg7[%c18, %c0_46], %78 {strides = array<i32>} : memref<64x128xf32, #tpu.memory_space<vmem>>, vector<1x128xf32>,
    %c2_i32_47 = arith.constant 2 : i32
    %80 = arith.muli %arg0, %c2_i32_47 : i32
    %c0_i32_48 = arith.constant 0 : i32
    %81 = arith.addi %80, %c0_i32_48 : i32
    %82 = arith.index_cast %81 : i32 to index
    %c11_49 = arith.constant 11 : index
    %83 = memref.load %arg1[%82, %c11_49] : memref<2x16xi32, #tpu.memory_space<smem>>
    %84 = arith.index_cast %83 : i32 to index
    %c0_50 = arith.constant 0 : index
    %85 = vector.load %arg2[%84, %c0_50] : memref<64x128xf32, #tpu.memory_space<vmem>>, vector<1x128xf32>
    %c19 = arith.constant 19 : index
    %c0_51 = arith.constant 0 : index
    %86 = vector.load %arg7[%c19, %c0_51] : memref<64x128xf32, #tpu.memory_space<vmem>>, vector<1x128xf32>
    tpu.vector_store %arg7[%c19, %c0_51], %85 {strides = array<i32>} : memref<64x128xf32, #tpu.memory_space<vmem>>, vector<1x128xf32>,
    %c2_i32_52 = arith.constant 2 : i32
    %87 = arith.muli %arg0, %c2_i32_52 : i32
    %c0_i32_53 = arith.constant 0 : i32
    %88 = arith.addi %87, %c0_i32_53 : i32
    %89 = arith.index_cast %88 : i32 to index
    %c12_54 = arith.constant 12 : index
    %90 = memref.load %arg1[%89, %c12_54] : memref<2x16xi32, #tpu.memory_space<smem>>
    %91 = arith.index_cast %90 : i32 to index
    %c0_55 = arith.constant 0 : index
    %92 = vector.load %arg2[%91, %c0_55] : memref<64x128xf32, #tpu.memory_space<vmem>>, vector<1x128xf32>
    %c20 = arith.constant 20 : index
    %c0_56 = arith.constant 0 : index
    %93 = vector.load %arg7[%c20, %c0_56] : memref<64x128xf32, #tpu.memory_space<vmem>>, vector<1x128xf32>
    tpu.vector_store %arg7[%c20, %c0_56], %92 {strides = array<i32>} : memref<64x128xf32, #tpu.memory_space<vmem>>, vector<1x128xf32>,
    %c2_i32_57 = arith.constant 2 : i32
    %94 = arith.muli %arg0, %c2_i32_57 : i32
    %c0_i32_58 = arith.constant 0 : i32
    %95 = arith.addi %94, %c0_i32_58 : i32
    %96 = arith.index_cast %95 : i32 to index
    %c13_59 = arith.constant 13 : index
    %97 = memref.load %arg1[%96, %c13_59] : memref<2x16xi32, #tpu.memory_space<smem>>
    %98 = arith.index_cast %97 : i32 to index
    %c0_60 = arith.constant 0 : index
    %99 = vector.load %arg2[%98, %c0_60] : memref<64x128xf32, #tpu.memory_space<vmem>>, vector<1x128xf32>
    %c21 = arith.constant 21 : index
    %c0_61 = arith.constant 0 : index
    %100 = vector.load %arg7[%c21, %c0_61] : memref<64x128xf32, #tpu.memory_space<vmem>>, vector<1x128xf32>
    tpu.vector_store %arg7[%c21, %c0_61], %99 {strides = array<i32>} : memref<64x128xf32, #tpu.memory_space<vmem>>, vector<1x128xf32>,
    %c2_i32_62 = arith.constant 2 : i32
    %101 = arith.muli %arg0, %c2_i32_62 : i32
    %c0_i32_63 = arith.constant 0 : i32
    %102 = arith.addi %101, %c0_i32_63 : i32
    %103 = arith.index_cast %102 : i32 to index
    %c14_64 = arith.constant 14 : index
    %104 = memref.load %arg1[%103, %c14_64] : memref<2x16xi32, #tpu.memory_space<smem>>
    %105 = arith.index_cast %104 : i32 to index
    %c0_65 = arith.constant 0 : index
    %106 = vector.load %arg2[%105, %c0_65] : memref<64x128xf32, #tpu.memory_space<vmem>>, vector<1x128xf32>
    %c22 = arith.constant 22 : index
    %c0_66 = arith.constant 0 : index
    %107 = vector.load %arg7[%c22, %c0_66] : memref<64x128xf32, #tpu.memory_space<vmem>>, vector<1x128xf32>
    tpu.vector_store %arg7[%c22, %c0_66], %106 {strides = array<i32>} : memref<64x128xf32, #tpu.memory_space<vmem>>, vector<1x128xf32>,
    %c2_i32_67 = arith.constant 2 : i32
    %108 = arith.muli %arg0, %c2_i32_67 : i32
    %c0_i32_68 = arith.constant 0 : i32
    %109 = arith.addi %108, %c0_i32_68 : i32
    %110 = arith.index_cast %109 : i32 to index
    %c15_69 = arith.constant 15 : index
    %111 = memref.load %arg1[%110, %c15_69] : memref<2x16xi32, #tpu.memory_space<smem>>
    %112 = arith.index_cast %111 : i32 to index
    %c0_70 = arith.constant 0 : index
    %113 = vector.load %arg2[%112, %c0_70] : memref<64x128xf32, #tpu.memory_space<vmem>>, vector<1x128xf32>
    %c23 = arith.constant 23 : index
    %c0_71 = arith.constant 0 : index
    %114 = vector.load %arg7[%c23, %c0_71] : memref<64x128xf32, #tpu.memory_space<vmem>>, vector<1x128xf32>
    tpu.vector_store %arg7[%c23, %c0_71], %113 {strides = array<i32>} : memref<64x128xf32, #tpu.memory_space<vmem>>, vector<1x128xf32>,
    %c2_i32_72 = arith.constant 2 : i32
    %115 = arith.muli %arg0, %c2_i32_72 : i32
    %c1_i32 = arith.constant 1 : i32
    %116 = arith.addi %115, %c1_i32 : i32
    %117 = arith.index_cast %116 : i32 to index
    %c0_73 = arith.constant 0 : index
    %118 = memref.load %arg1[%117, %c0_73] : memref<2x16xi32, #tpu.memory_space<smem>>
    %119 = arith.index_cast %118 : i32 to index
    %c0_74 = arith.constant 0 : index
    %120 = vector.load %arg2[%119, %c0_74] : memref<64x128xf32, #tpu.memory_space<vmem>>, vector<1x128xf32>
    %c32 = arith.constant 32 : index
    %c0_75 = arith.constant 0 : index
    %121 = vector.load %arg7[%c32, %c0_75] : memref<64x128xf32, #tpu.memory_space<vmem>>, vector<1x128xf32>
    tpu.vector_store %arg7[%c32, %c0_75], %120 {strides = array<i32>} : memref<64x128xf32, #tpu.memory_space<vmem>>, vector<1x128xf32>,
    %c2_i32_76 = arith.constant 2 : i32
    %122 = arith.muli %arg0, %c2_i32_76 : i32
    %c1_i32_77 = arith.constant 1 : i32
    %123 = arith.addi %122, %c1_i32_77 : i32
    %124 = arith.index_cast %123 : i32 to index
    %c1_78 = arith.constant 1 : index
    %125 = memref.load %arg1[%124, %c1_78] : memref<2x16xi32, #tpu.memory_space<smem>>
    %126 = arith.index_cast %125 : i32 to index
    %c0_79 = arith.constant 0 : index
    %127 = vector.load %arg2[%126, %c0_79] : memref<64x128xf32, #tpu.memory_space<vmem>>, vector<1x128xf32>
    %c33 = arith.constant 33 : index
    %c0_80 = arith.constant 0 : index
    %128 = vector.load %arg7[%c33, %c0_80] : memref<64x128xf32, #tpu.memory_space<vmem>>, vector<1x128xf32>
    tpu.vector_store %arg7[%c33, %c0_80], %127 {strides = array<i32>} : memref<64x128xf32, #tpu.memory_space<vmem>>, vector<1x128xf32>,
    %c2_i32_81 = arith.constant 2 : i32
    %129 = arith.muli %arg0, %c2_i32_81 : i32
    %c1_i32_82 = arith.constant 1 : i32
    %130 = arith.addi %129, %c1_i32_82 : i32
    %131 = arith.index_cast %130 : i32 to index
    %c2_83 = arith.constant 2 : index
    %132 = memref.load %arg1[%131, %c2_83] : memref<2x16xi32, #tpu.memory_space<smem>>
    %133 = arith.index_cast %132 : i32 to index
    %c0_84 = arith.constant 0 : index
    %134 = vector.load %arg2[%133, %c0_84] : memref<64x128xf32, #tpu.memory_space<vmem>>, vector<1x128xf32>
    %c34 = arith.constant 34 : index
    %c0_85 = arith.constant 0 : index
    %135 = vector.load %arg7[%c34, %c0_85] : memref<64x128xf32, #tpu.memory_space<vmem>>, vector<1x128xf32>
    tpu.vector_store %arg7[%c34, %c0_85], %134 {strides = array<i32>} : memref<64x128xf32, #tpu.memory_space<vmem>>, vector<1x128xf32>,
    %c2_i32_86 = arith.constant 2 : i32
    %136 = arith.muli %arg0, %c2_i32_86 : i32
    %c1_i32_87 = arith.constant 1 : i32
    %137 = arith.addi %136, %c1_i32_87 : i32
    %138 = arith.index_cast %137 : i32 to index
    %c3_88 = arith.constant 3 : index
    %139 = memref.load %arg1[%138, %c3_88] : memref<2x16xi32, #tpu.memory_space<smem>>
    %140 = arith.index_cast %139 : i32 to index
    %c0_89 = arith.constant 0 : index
    %141 = vector.load %arg2[%140, %c0_89] : memref<64x128xf32, #tpu.memory_space<vmem>>, vector<1x128xf32>
    %c35 = arith.constant 35 : index
    %c0_90 = arith.constant 0 : index
    %142 = vector.load %arg7[%c35, %c0_90] : memref<64x128xf32, #tpu.memory_space<vmem>>, vector<1x128xf32>
    tpu.vector_store %arg7[%c35, %c0_90], %141 {strides = array<i32>} : memref<64x128xf32, #tpu.memory_space<vmem>>, vector<1x128xf32>,
    %c2_i32_91 = arith.constant 2 : i32
    %143 = arith.muli %arg0, %c2_i32_91 : i32
    %c1_i32_92 = arith.constant 1 : i32
    %144 = arith.addi %143, %c1_i32_92 : i32
    %145 = arith.index_cast %144 : i32 to index
    %c4_93 = arith.constant 4 : index
    %146 = memref.load %arg1[%145, %c4_93] : memref<2x16xi32, #tpu.memory_space<smem>>
    %147 = arith.index_cast %146 : i32 to index
    %c0_94 = arith.constant 0 : index
    %148 = vector.load %arg2[%147, %c0_94] : memref<64x128xf32, #tpu.memory_space<vmem>>, vector<1x128xf32>
    %c36 = arith.constant 36 : index
    %c0_95 = arith.constant 0 : index
    %149 = vector.load %arg7[%c36, %c0_95] : memref<64x128xf32, #tpu.memory_space<vmem>>, vector<1x128xf32>
    tpu.vector_store %arg7[%c36, %c0_95], %148 {strides = array<i32>} : memref<64x128xf32, #tpu.memory_space<vmem>>, vector<1x128xf32>,
    %c2_i32_96 = arith.constant 2 : i32
    %150 = arith.muli %arg0, %c2_i32_96 : i32
    %c1_i32_97 = arith.constant 1 : i32
    %151 = arith.addi %150, %c1_i32_97 : i32
    %152 = arith.index_cast %151 : i32 to index
    %c5_98 = arith.constant 5 : index
    %153 = memref.load %arg1[%152, %c5_98] : memref<2x16xi32, #tpu.memory_space<smem>>
    %154 = arith.index_cast %153 : i32 to index
    %c0_99 = arith.constant 0 : index
    %155 = vector.load %arg2[%154, %c0_99] : memref<64x128xf32, #tpu.memory_space<vmem>>, vector<1x128xf32>
    %c37 = arith.constant 37 : index
    %c0_100 = arith.constant 0 : index
    %156 = vector.load %arg7[%c37, %c0_100] : memref<64x128xf32, #tpu.memory_space<vmem>>, vector<1x128xf32>
    tpu.vector_store %arg7[%c37, %c0_100], %155 {strides = array<i32>} : memref<64x128xf32, #tpu.memory_space<vmem>>, vector<1x128xf32>,
    %c2_i32_101 = arith.constant 2 : i32
    %157 = arith.muli %arg0, %c2_i32_101 : i32
    %c1_i32_102 = arith.constant 1 : i32
    %158 = arith.addi %157, %c1_i32_102 : i32
    %159 = arith.index_cast %158 : i32 to index
    %c6_103 = arith.constant 6 : index
    %160 = memref.load %arg1[%159, %c6_103] : memref<2x16xi32, #tpu.memory_space<smem>>
    %161 = arith.index_cast %160 : i32 to index
    %c0_104 = arith.constant 0 : index
    %162 = vector.load %arg2[%161, %c0_104] : memref<64x128xf32, #tpu.memory_space<vmem>>, vector<1x128xf32>
    %c38 = arith.constant 38 : index
    %c0_105 = arith.constant 0 : index
    %163 = vector.load %arg7[%c38, %c0_105] : memref<64x128xf32, #tpu.memory_space<vmem>>, vector<1x128xf32>
    tpu.vector_store %arg7[%c38, %c0_105], %162 {strides = array<i32>} : memref<64x128xf32, #tpu.memory_space<vmem>>, vector<1x128xf32>,
    %c2_i32_106 = arith.constant 2 : i32
    %164 = arith.muli %arg0, %c2_i32_106 : i32
    %c1_i32_107 = arith.constant 1 : i32
    %165 = arith.addi %164, %c1_i32_107 : i32
    %166 = arith.index_cast %165 : i32 to index
    %c7_108 = arith.constant 7 : index
    %167 = memref.load %arg1[%166, %c7_108] : memref<2x16xi32, #tpu.memory_space<smem>>
    %168 = arith.index_cast %167 : i32 to index
    %c0_109 = arith.constant 0 : index
    %169 = vector.load %arg2[%168, %c0_109] : memref<64x128xf32, #tpu.memory_space<vmem>>, vector<1x128xf32>
    %c39 = arith.constant 39 : index
    %c0_110 = arith.constant 0 : index
    %170 = vector.load %arg7[%c39, %c0_110] : memref<64x128xf32, #tpu.memory_space<vmem>>, vector<1x128xf32>
    tpu.vector_store %arg7[%c39, %c0_110], %169 {strides = array<i32>} : memref<64x128xf32, #tpu.memory_space<vmem>>, vector<1x128xf32>,
    %c2_i32_111 = arith.constant 2 : i32
    %171 = arith.muli %arg0, %c2_i32_111 : i32
    %c1_i32_112 = arith.constant 1 : i32
    %172 = arith.addi %171, %c1_i32_112 : i32
    %173 = arith.index_cast %172 : i32 to index
    %c8_113 = arith.constant 8 : index
    %174 = memref.load %arg1[%173, %c8_113] : memref<2x16xi32, #tpu.memory_space<smem>>
    %175 = arith.index_cast %174 : i32 to index
    %c0_114 = arith.constant 0 : index
    %176 = vector.load %arg2[%175, %c0_114] : memref<64x128xf32, #tpu.memory_space<vmem>>, vector<1x128xf32>
    %c40 = arith.constant 40 : index
    %c0_115 = arith.constant 0 : index
    %177 = vector.load %arg7[%c40, %c0_115] : memref<64x128xf32, #tpu.memory_space<vmem>>, vector<1x128xf32>
    tpu.vector_store %arg7[%c40, %c0_115], %176 {strides = array<i32>} : memref<64x128xf32, #tpu.memory_space<vmem>>, vector<1x128xf32>,
    %c2_i32_116 = arith.constant 2 : i32
    %178 = arith.muli %arg0, %c2_i32_116 : i32
    %c1_i32_117 = arith.constant 1 : i32
    %179 = arith.addi %178, %c1_i32_117 : i32
    %180 = arith.index_cast %179 : i32 to index
    %c9_118 = arith.constant 9 : index
    %181 = memref.load %arg1[%180, %c9_118] : memref<2x16xi32, #tpu.memory_space<smem>>
    %182 = arith.index_cast %181 : i32 to index
    %c0_119 = arith.constant 0 : index
    %183 = vector.load %arg2[%182, %c0_119] : memref<64x128xf32, #tpu.memory_space<vmem>>, vector<1x128xf32>
    %c41 = arith.constant 41 : index
    %c0_120 = arith.constant 0 : index
    %184 = vector.load %arg7[%c41, %c0_120] : memref<64x128xf32, #tpu.memory_space<vmem>>, vector<1x128xf32>
    tpu.vector_store %arg7[%c41, %c0_120], %183 {strides = array<i32>} : memref<64x128xf32, #tpu.memory_space<vmem>>, vector<1x128xf32>,
    %c2_i32_121 = arith.constant 2 : i32
    %185 = arith.muli %arg0, %c2_i32_121 : i32
    %c1_i32_122 = arith.constant 1 : i32
    %186 = arith.addi %185, %c1_i32_122 : i32
    %187 = arith.index_cast %186 : i32 to index
    %c10_123 = arith.constant 10 : index
    %188 = memref.load %arg1[%187, %c10_123] : memref<2x16xi32, #tpu.memory_space<smem>>
    %189 = arith.index_cast %188 : i32 to index
    %c0_124 = arith.constant 0 : index
    %190 = vector.load %arg2[%189, %c0_124] : memref<64x128xf32, #tpu.memory_space<vmem>>, vector<1x128xf32>
    %c42 = arith.constant 42 : index
    %c0_125 = arith.constant 0 : index
    %191 = vector.load %arg7[%c42, %c0_125] : memref<64x128xf32, #tpu.memory_space<vmem>>, vector<1x128xf32>
    tpu.vector_store %arg7[%c42, %c0_125], %190 {strides = array<i32>} : memref<64x128xf32, #tpu.memory_space<vmem>>, vector<1x128xf32>,
    %c2_i32_126 = arith.constant 2 : i32
    %192 = arith.muli %arg0, %c2_i32_126 : i32
    %c1_i32_127 = arith.constant 1 : i32
    %193 = arith.addi %192, %c1_i32_127 : i32
    %194 = arith.index_cast %193 : i32 to index
    %c11_128 = arith.constant 11 : index
    %195 = memref.load %arg1[%194, %c11_128] : memref<2x16xi32, #tpu.memory_space<smem>>
    %196 = arith.index_cast %195 : i32 to index
    %c0_129 = arith.constant 0 : index
    %197 = vector.load %arg2[%196, %c0_129] : memref<64x128xf32, #tpu.memory_space<vmem>>, vector<1x128xf32>
    %c43 = arith.constant 43 : index
    %c0_130 = arith.constant 0 : index
    %198 = vector.load %arg7[%c43, %c0_130] : memref<64x128xf32, #tpu.memory_space<vmem>>, vector<1x128xf32>
    tpu.vector_store %arg7[%c43, %c0_130], %197 {strides = array<i32>} : memref<64x128xf32, #tpu.memory_space<vmem>>, vector<1x128xf32>,
    %c2_i32_131 = arith.constant 2 : i32
    %199 = arith.muli %arg0, %c2_i32_131 : i32
    %c1_i32_132 = arith.constant 1 : i32
    %200 = arith.addi %199, %c1_i32_132 : i32
    %201 = arith.index_cast %200 : i32 to index
    %c12_133 = arith.constant 12 : index
    %202 = memref.load %arg1[%201, %c12_133] : memref<2x16xi32, #tpu.memory_space<smem>>
    %203 = arith.index_cast %202 : i32 to index
    %c0_134 = arith.constant 0 : index
    %204 = vector.load %arg2[%203, %c0_134] : memref<64x128xf32, #tpu.memory_space<vmem>>, vector<1x128xf32>
    %c44 = arith.constant 44 : index
    %c0_135 = arith.constant 0 : index
    %205 = vector.load %arg7[%c44, %c0_135] : memref<64x128xf32, #tpu.memory_space<vmem>>, vector<1x128xf32>
    tpu.vector_store %arg7[%c44, %c0_135], %204 {strides = array<i32>} : memref<64x128xf32, #tpu.memory_space<vmem>>, vector<1x128xf32>,
    %c2_i32_136 = arith.constant 2 : i32
    %206 = arith.muli %arg0, %c2_i32_136 : i32
    %c1_i32_137 = arith.constant 1 : i32
    %207 = arith.addi %206, %c1_i32_137 : i32
    %208 = arith.index_cast %207 : i32 to index
    %c13_138 = arith.constant 13 : index
    %209 = memref.load %arg1[%208, %c13_138] : memref<2x16xi32, #tpu.memory_space<smem>>
    %210 = arith.index_cast %209 : i32 to index
    %c0_139 = arith.constant 0 : index
    %211 = vector.load %arg2[%210, %c0_139] : memref<64x128xf32, #tpu.memory_space<vmem>>, vector<1x128xf32>
    %c45 = arith.constant 45 : index
    %c0_140 = arith.constant 0 : index
    %212 = vector.load %arg7[%c45, %c0_140] : memref<64x128xf32, #tpu.memory_space<vmem>>, vector<1x128xf32>
    tpu.vector_store %arg7[%c45, %c0_140], %211 {strides = array<i32>} : memref<64x128xf32, #tpu.memory_space<vmem>>, vector<1x128xf32>,
    %c2_i32_141 = arith.constant 2 : i32
    %213 = arith.muli %arg0, %c2_i32_141 : i32
    %c1_i32_142 = arith.constant 1 : i32
    %214 = arith.addi %213, %c1_i32_142 : i32
    %215 = arith.index_cast %214 : i32 to index
    %c14_143 = arith.constant 14 : index
    %216 = memref.load %arg1[%215, %c14_143] : memref<2x16xi32, #tpu.memory_space<smem>>
    %217 = arith.index_cast %216 : i32 to index
    %c0_144 = arith.constant 0 : index
    %218 = vector.load %arg2[%217, %c0_144] : memref<64x128xf32, #tpu.memory_space<vmem>>, vector<1x128xf32>
    %c46 = arith.constant 46 : index
    %c0_145 = arith.constant 0 : index
    %219 = vector.load %arg7[%c46, %c0_145] : memref<64x128xf32, #tpu.memory_space<vmem>>, vector<1x128xf32>
    tpu.vector_store %arg7[%c46, %c0_145], %218 {strides = array<i32>} : memref<64x128xf32, #tpu.memory_space<vmem>>, vector<1x128xf32>,
    %c2_i32_146 = arith.constant 2 : i32
    %220 = arith.muli %arg0, %c2_i32_146 : i32
    %c1_i32_147 = arith.constant 1 : i32
    %221 = arith.addi %220, %c1_i32_147 : i32
    %222 = arith.index_cast %221 : i32 to index
    %c15_148 = arith.constant 15 : index
    %223 = memref.load %arg1[%222, %c15_148] : memref<2x16xi32, #tpu.memory_space<smem>>
    %224 = arith.index_cast %223 : i32 to index
    %c0_149 = arith.constant 0 : index
    %225 = vector.load %arg2[%224, %c0_149] : memref<64x128xf32, #tpu.memory_space<vmem>>, vector<1x128xf32>
    %c47 = arith.constant 47 : index
    %c0_150 = arith.constant 0 : index
    %226 = vector.load %arg7[%c47, %c0_150] : memref<64x128xf32, #tpu.memory_space<vmem>>, vector<1x128xf32>
    tpu.vector_store %arg7[%c47, %c0_150], %225 {strides = array<i32>} : memref<64x128xf32, #tpu.memory_space<vmem>>, vector<1x128xf32>,
    %c0_151 = arith.constant 0 : index
    %c0_152 = arith.constant 0 : index
    %227 = vector.load %arg7[%c0_151, %c0_152] : memref<64x128xf32, #tpu.memory_space<vmem>>, vector<64x128xf32>
    %228 = vector.extract_strided_slice %227 {offsets = [6, 0], sizes = [48, 128], strides = [1, 1]} : vector<64x128xf32> to vector<48x128xf32>
    %229 = arith.truncf %228 : vector<48x128xf32> to vector<48x128xbf16>
    %230 = vector.extract_strided_slice %227 {offsets = [7, 0], sizes = [48, 128], strides = [1, 1]} : vector<64x128xf32> to vector<48x128xf32>
    %231 = arith.truncf %230 : vector<48x128xf32> to vector<48x128xbf16>
    %232 = vector.extract_strided_slice %227 {offsets = [8, 0], sizes = [48, 128], strides = [1, 1]} : vector<64x128xf32> to vector<48x128xf32>
    %233 = arith.truncf %232 : vector<48x128xf32> to vector<48x128xbf16>
    %234 = vector.extract_strided_slice %227 {offsets = [9, 0], sizes = [48, 128], strides = [1, 1]} : vector<64x128xf32> to vector<48x128xf32>
    %235 = arith.truncf %234 : vector<48x128xf32> to vector<48x128xbf16>
    %236 = vector.extract_strided_slice %227 {offsets = [10, 0], sizes = [48, 128], strides = [1, 1]} : vector<64x128xf32> to vector<48x128xf32>
    %237 = arith.truncf %236 : vector<48x128xf32> to vector<48x128xbf16>
    %238 = tpu.concatenate %229, %231, %233, %235, %237 in 1 : vector<48x128xbf16>, vector<48x128xbf16>, vector<48x128xbf16>, vector<48x128xbf16>, vector<48x128xbf16> -> vector<48x640xbf16>
    %c0_153 = arith.constant 0 : index
    %c0_154 = arith.constant 0 : index
    %c0_155 = arith.constant 0 : index
    %239 = vector.load %arg3[%c0_153, %c0_154, %c0_155] : memref<3x640x128xbf16, #tpu.memory_space<vmem>>, vector<1x640x128xbf16>
    %240 = vector.shape_cast %239 : vector<1x640x128xbf16> to vector<640x128xbf16>
    %cst = arith.constant dense<0.000000e+00> : vector<48x128xf32>
    %241 = tpu.matmul %238, %240, %cst {dimension_numbers = #tpu.dot_dimension_numbers<[1], [0], [0], [1], [0, 0, 1, 1], [], []>} : vector<48x640xbf16>, vector<640x128xbf16>, vector<48x128xf32> -> vector<48x128xf32>
    %c0_156 = arith.constant 0 : index
    %c0_157 = arith.constant 0 : index
    %c0_158 = arith.constant 0 : index
    %242 = vector.load %arg4[%c0_156, %c0_157, %c0_158] : memref<3x1x128xf32, #tpu.memory_space<vmem>>, vector<1x1x128xf32>
    %243 = vector.shape_cast %242 : vector<1x1x128xf32> to vector<1x128xf32>
    %244 = vector.broadcast %243 : vector<1x128xf32> to vector<48x128xf32>
    %245 = arith.mulf %241, %244 : vector<48x128xf32>
    %c0_159 = arith.constant 0 : index
    %c0_160 = arith.constant 0 : index
    %c0_161 = arith.constant 0 : index
    %246 = vector.load %arg5[%c0_159, %c0_160, %c0_161] : memref<3x1x128xf32, #tpu.memory_space<vmem>>, vector<1x1x128xf32>
    %247 = vector.shape_cast %246 : vector<1x1x128xf32> to vector<1x128xf32>
    %248 = vector.broadcast %247 : vector<1x128xf32> to vector<48x128xf32>
    %249 = arith.addf %245, %248 : vector<48x128xf32>
    %cst_162 = arith.constant 0.000000e+00 : f32
    %250 = vector.broadcast %cst_162 : f32 to vector<48x128xf32>
    %251 = arith.maximumf %249, %250 : vector<48x128xf32>
    %252 = vector.extract_strided_slice %251 {offsets = [0, 0], sizes = [16, 128], strides = [1, 1]} : vector<48x128xf32> to vector<16x128xf32>
    %c8_163 = arith.constant 8 : index
    %c0_164 = arith.constant 0 : index
    %253 = vector.load %arg7[%c8_163, %c0_164] : memref<64x128xf32, #tpu.memory_space<vmem>>, vector<16x128xf32>
    tpu.vector_store %arg7[%c8_163, %c0_164], %252 {strides = array<i32>} : memref<64x128xf32, #tpu.memory_space<vmem>>, vector<16x128xf32>,
    %254 = vector.extract_strided_slice %251 {offsets = [24, 0], sizes = [16, 128], strides = [1, 1]} : vector<48x128xf32> to vector<16x128xf32>
    %c32_165 = arith.constant 32 : index
    %c0_166 = arith.constant 0 : index
    %255 = vector.load %arg7[%c32_165, %c0_166] : memref<64x128xf32, #tpu.memory_space<vmem>>, vector<16x128xf32>
    tpu.vector_store %arg7[%c32_165, %c0_166], %254 {strides = array<i32>} : memref<64x128xf32, #tpu.memory_space<vmem>>, vector<16x128xf32>,
    %c0_167 = arith.constant 0 : index
    %c0_168 = arith.constant 0 : index
    %256 = vector.load %arg7[%c0_167, %c0_168] : memref<64x128xf32, #tpu.memory_space<vmem>>, vector<64x128xf32>
    %257 = vector.extract_strided_slice %256 {offsets = [6, 0], sizes = [48, 128], strides = [1, 1]} : vector<64x128xf32> to vector<48x128xf32>
    %258 = arith.truncf %257 : vector<48x128xf32> to vector<48x128xbf16>
    %259 = vector.extract_strided_slice %256 {offsets = [7, 0], sizes = [48, 128], strides = [1, 1]} : vector<64x128xf32> to vector<48x128xf32>
    %260 = arith.truncf %259 : vector<48x128xf32> to vector<48x128xbf16>
    %261 = vector.extract_strided_slice %256 {offsets = [8, 0], sizes = [48, 128], strides = [1, 1]} : vector<64x128xf32> to vector<48x128xf32>
    %262 = arith.truncf %261 : vector<48x128xf32> to vector<48x128xbf16>
    %263 = vector.extract_strided_slice %256 {offsets = [9, 0], sizes = [48, 128], strides = [1, 1]} : vector<64x128xf32> to vector<48x128xf32>
    %264 = arith.truncf %263 : vector<48x128xf32> to vector<48x128xbf16>
    %265 = vector.extract_strided_slice %256 {offsets = [10, 0], sizes = [48, 128], strides = [1, 1]} : vector<64x128xf32> to vector<48x128xf32>
    %266 = arith.truncf %265 : vector<48x128xf32> to vector<48x128xbf16>
    %267 = tpu.concatenate %258, %260, %262, %264, %266 in 1 : vector<48x128xbf16>, vector<48x128xbf16>, vector<48x128xbf16>, vector<48x128xbf16>, vector<48x128xbf16> -> vector<48x640xbf16>
    %c1_169 = arith.constant 1 : index
    %c0_170 = arith.constant 0 : index
    %c0_171 = arith.constant 0 : index
    %268 = vector.load %arg3[%c1_169, %c0_170, %c0_171] : memref<3x640x128xbf16, #tpu.memory_space<vmem>>, vector<1x640x128xbf16>
    %269 = vector.shape_cast %268 : vector<1x640x128xbf16> to vector<640x128xbf16>
    %cst_172 = arith.constant dense<0.000000e+00> : vector<48x128xf32>
    %270 = tpu.matmul %267, %269, %cst_172 {dimension_numbers = #tpu.dot_dimension_numbers<[1], [0], [0], [1], [0, 0, 1, 1], [], []>} : vector<48x640xbf16>, vector<640x128xbf16>, vector<48x128xf32> -> vector<48x128xf32>
    %c1_173 = arith.constant 1 : index
    %c0_174 = arith.constant 0 : index
    %c0_175 = arith.constant 0 : index
    %271 = vector.load %arg4[%c1_173, %c0_174, %c0_175] : memref<3x1x128xf32, #tpu.memory_space<vmem>>, vector<1x1x128xf32>
    %272 = vector.shape_cast %271 : vector<1x1x128xf32> to vector<1x128xf32>
    %273 = vector.broadcast %272 : vector<1x128xf32> to vector<48x128xf32>
    %274 = arith.mulf %270, %273 : vector<48x128xf32>
    %c1_176 = arith.constant 1 : index
    %c0_177 = arith.constant 0 : index
    %c0_178 = arith.constant 0 : index
    %275 = vector.load %arg5[%c1_176, %c0_177, %c0_178] : memref<3x1x128xf32, #tpu.memory_space<vmem>>, vector<1x1x128xf32>
    %276 = vector.shape_cast %275 : vector<1x1x128xf32> to vector<1x128xf32>
    %277 = vector.broadcast %276 : vector<1x128xf32> to vector<48x128xf32>
    %278 = arith.addf %274, %277 : vector<48x128xf32>
    %cst_179 = arith.constant 0.000000e+00 : f32
    %279 = vector.broadcast %cst_179 : f32 to vector<48x128xf32>
    %280 = arith.maximumf %278, %279 : vector<48x128xf32>
    %281 = vector.extract_strided_slice %280 {offsets = [0, 0], sizes = [16, 128], strides = [1, 1]} : vector<48x128xf32> to vector<16x128xf32>
    %c8_180 = arith.constant 8 : index
    %c0_181 = arith.constant 0 : index
    %282 = vector.load %arg7[%c8_180, %c0_181] : memref<64x128xf32, #tpu.memory_space<vmem>>, vector<16x128xf32>
    tpu.vector_store %arg7[%c8_180, %c0_181], %281 {strides = array<i32>} : memref<64x128xf32, #tpu.memory_space<vmem>>, vector<16x128xf32>,
    %283 = vector.extract_strided_slice %280 {offsets = [24, 0], sizes = [16, 128], strides = [1, 1]} : vector<48x128xf32> to vector<16x128xf32>
    %c32_182 = arith.constant 32 : index
    %c0_183 = arith.constant 0 : index
    %284 = vector.load %arg7[%c32_182, %c0_183] : memref<64x128xf32, #tpu.memory_space<vmem>>, vector<16x128xf32>
    tpu.vector_store %arg7[%c32_182, %c0_183], %283 {strides = array<i32>} : memref<64x128xf32, #tpu.memory_space<vmem>>, vector<16x128xf32>,
    %c0_184 = arith.constant 0 : index
    %c0_185 = arith.constant 0 : index
    %285 = vector.load %arg7[%c0_184, %c0_185] : memref<64x128xf32, #tpu.memory_space<vmem>>, vector<64x128xf32>
    %286 = vector.extract_strided_slice %285 {offsets = [6, 0], sizes = [48, 128], strides = [1, 1]} : vector<64x128xf32> to vector<48x128xf32>
    %287 = arith.truncf %286 : vector<48x128xf32> to vector<48x128xbf16>
    %288 = vector.extract_strided_slice %285 {offsets = [7, 0], sizes = [48, 128], strides = [1, 1]} : vector<64x128xf32> to vector<48x128xf32>
    %289 = arith.truncf %288 : vector<48x128xf32> to vector<48x128xbf16>
    %290 = vector.extract_strided_slice %285 {offsets = [8, 0], sizes = [48, 128], strides = [1, 1]} : vector<64x128xf32> to vector<48x128xf32>
    %291 = arith.truncf %290 : vector<48x128xf32> to vector<48x128xbf16>
    %292 = vector.extract_strided_slice %285 {offsets = [9, 0], sizes = [48, 128], strides = [1, 1]} : vector<64x128xf32> to vector<48x128xf32>
    %293 = arith.truncf %292 : vector<48x128xf32> to vector<48x128xbf16>
    %294 = vector.extract_strided_slice %285 {offsets = [10, 0], sizes = [48, 128], strides = [1, 1]} : vector<64x128xf32> to vector<48x128xf32>
    %295 = arith.truncf %294 : vector<48x128xf32> to vector<48x128xbf16>
    %296 = tpu.concatenate %287, %289, %291, %293, %295 in 1 : vector<48x128xbf16>, vector<48x128xbf16>, vector<48x128xbf16>, vector<48x128xbf16>, vector<48x128xbf16> -> vector<48x640xbf16>
    %c2_186 = arith.constant 2 : index
    %c0_187 = arith.constant 0 : index
    %c0_188 = arith.constant 0 : index
    %297 = vector.load %arg3[%c2_186, %c0_187, %c0_188] : memref<3x640x128xbf16, #tpu.memory_space<vmem>>, vector<1x640x128xbf16>
    %298 = vector.shape_cast %297 : vector<1x640x128xbf16> to vector<640x128xbf16>
    %cst_189 = arith.constant dense<0.000000e+00> : vector<48x128xf32>
    %299 = tpu.matmul %296, %298, %cst_189 {dimension_numbers = #tpu.dot_dimension_numbers<[1], [0], [0], [1], [0, 0, 1, 1], [], []>} : vector<48x640xbf16>, vector<640x128xbf16>, vector<48x128xf32> -> vector<48x128xf32>
    %c2_190 = arith.constant 2 : index
    %c0_191 = arith.constant 0 : index
    %c0_192 = arith.constant 0 : index
    %300 = vector.load %arg4[%c2_190, %c0_191, %c0_192] : memref<3x1x128xf32, #tpu.memory_space<vmem>>, vector<1x1x128xf32>
    %301 = vector.shape_cast %300 : vector<1x1x128xf32> to vector<1x128xf32>
    %302 = vector.broadcast %301 : vector<1x128xf32> to vector<48x128xf32>
    %303 = arith.mulf %299, %302 : vector<48x128xf32>
    %c2_193 = arith.constant 2 : index
    %c0_194 = arith.constant 0 : index
    %c0_195 = arith.constant 0 : index
    %304 = vector.load %arg5[%c2_193, %c0_194, %c0_195] : memref<3x1x128xf32, #tpu.memory_space<vmem>>, vector<1x1x128xf32>
    %305 = vector.shape_cast %304 : vector<1x1x128xf32> to vector<1x128xf32>
    %306 = vector.broadcast %305 : vector<1x128xf32> to vector<48x128xf32>
    %307 = arith.addf %303, %306 : vector<48x128xf32>
    %cst_196 = arith.constant 0.000000e+00 : f32
    %308 = vector.broadcast %cst_196 : f32 to vector<48x128xf32>
    %309 = arith.maximumf %307, %308 : vector<48x128xf32>
    %310 = vector.extract_strided_slice %309 {offsets = [0, 0], sizes = [16, 128], strides = [1, 1]} : vector<48x128xf32> to vector<16x128xf32>
    %c0_197 = arith.constant 0 : index
    %c0_198 = arith.constant 0 : index
    %c0_199 = arith.constant 0 : index
    %311 = vector.load %arg6[%c0_197, %c0_198, %c0_199] : memref<2x16x128xf32, #tpu.memory_space<vmem>>, vector<1x16x128xf32>
    %312 = vector.shape_cast %311 : vector<1x16x128xf32> to vector<16x128xf32>
    %313 = vector.shape_cast %310 : vector<16x128xf32> to vector<1x16x128xf32>
    tpu.vector_store %arg6[%c0_197, %c0_198, %c0_199], %313 {strides = array<i32>} : memref<2x16x128xf32, #tpu.memory_space<vmem>>, vector<1x16x128xf32>,
    %314 = vector.extract_strided_slice %309 {offsets = [24, 0], sizes = [16, 128], strides = [1, 1]} : vector<48x128xf32> to vector<16x128xf32>
    %c1_200 = arith.constant 1 : index
    %c0_201 = arith.constant 0 : index
    %c0_202 = arith.constant 0 : index
    %315 = vector.load %arg6[%c1_200, %c0_201, %c0_202] : memref<2x16x128xf32, #tpu.memory_space<vmem>>, vector<1x16x128xf32>
    %316 = vector.shape_cast %315 : vector<1x16x128xf32> to vector<16x128xf32>
    %317 = vector.shape_cast %314 : vector<16x128xf32> to vector<1x16x128xf32>
    tpu.vector_store %arg6[%c1_200, %c0_201, %c0_202], %317 {strides = array<i32>} : memref<2x16x128xf32, #tpu.memory_space<vmem>>, vector<1x16x128xf32>,
    return
  }
  func.func @transform_0(%arg0: i32, %arg1: memref<2x16xi32, #tpu.memory_space<smem>>) -> (i32, i32) {
    %c0_i32 = arith.constant 0 : i32
    %c0_i32_0 = arith.constant 0 : i32
    %c0_i32_1 = arith.constant 0 : i32
    return %c0_i32, %c0_i32_0 : i32, i32
  }
  func.func @transform_1(%arg0: i32, %arg1: memref<2x16xi32, #tpu.memory_space<smem>>) -> (i32, i32, i32) {
    %c0_i32 = arith.constant 0 : i32
    %c0_i32_0 = arith.constant 0 : i32
    %c0_i32_1 = arith.constant 0 : i32
    %c0_i32_2 = arith.constant 0 : i32
    return %c0_i32, %c0_i32_0, %c0_i32_1 : i32, i32, i32
  }
  func.func @transform_2(%arg0: i32, %arg1: memref<2x16xi32, #tpu.memory_space<smem>>) -> (i32, i32, i32) {
    %c0_i32 = arith.constant 0 : i32
    %c0_i32_0 = arith.constant 0 : i32
    %c0_i32_1 = arith.constant 0 : i32
    %c0_i32_2 = arith.constant 0 : i32
    return %c0_i32, %c0_i32_0, %c0_i32_1 : i32, i32, i32
  }
  func.func @transform_3(%arg0: i32, %arg1: memref<2x16xi32, #tpu.memory_space<smem>>) -> (i32, i32, i32) {
    %c0_i32 = arith.constant 0 : i32
    %c0_i32_0 = arith.constant 0 : i32
    %c0_i32_1 = arith.constant 0 : i32
    %c0_i32_2 = arith.constant 0 : i32
    return %c0_i32, %c0_i32_0, %c0_i32_1 : i32, i32, i32
  }
  func.func @transform_4(%arg0: i32, %arg1: memref<2x16xi32, #tpu.memory_space<smem>>) -> (i32, i32, i32) {
    %c0_i32 = arith.constant 0 : i32
    %c0_i32_0 = arith.constant 0 : i32
    %c0_i32_1 = arith.constant 0 : i32
    return %arg0, %c0_i32, %c0_i32_0 : i32, i32, i32
  }
}

</mosaic_0001>

<bundles_post_ra>
// kernel: conv_module_forward.1
= control target key start
LH: loop header
LB: loop body
LE: loop exit
PB: predicated region body
PF: predicated region fallthrough
CT: control target
= control target key end

     0   :  { %s2902_s21 = smov [#allocation4]   ;;  %s3334_s0 = inlined_call_operand.hbm [shape: s32[2,16], index: 0, kind: input, shape index: {}]   ;;  %s3335_s1 = inlined_call_operand.hbm [shape: f32[64,128], index: 1, kind: input, shape index: {}]   ;;  %s3336_s2 = inlined_call_operand.hbm [shape: bf16[3,640,128], index: 2, kind: input, shape index: {}]   ;;  %s3337_s3 = inlined_call_operand.hbm [shape: f32[3,1,128], index: 3, kind: input, shape index: {}]   ;;  %s3338_s4 = inlined_call_operand.vmem [shape: f32[3,1,128], index: 4, kind: input, shape index: {}]   ;;  %s3339_s5 = inlined_call_operand.vmem [shape: f32[2,16,128], index: 5, kind: output, shape index: {}]  }
   0x1   :  { %s11_s20 = sshll.u32 %s3334_s0, 4  ;;  %s12_s20 = int_to_ptr.hbm [resolvable:$true] %s11_s20 }
   0x2   :  { %14 = dma.hbm_to_smem %s12_s20, 32, %s2902_s21, [#allocation3] }
   0x3   :  { %2896 = dma.done.wait [#allocation3], 32 }
   0x4   :  { %2897 = vsyncadd [#allocation3], 4294967264 }
   0x5   :  { %17 = sfence }
   0x6   :  { %18 = vsyncpa [#allocation6], 0 }
   0x7   :  { %19 = vsyncpa [#allocation8], 0  ;;  %s37_s24 = sshll.u32 %s3336_s2, 4  ;;  %s2903_s25 = smov [#allocation7]   ;;  %s38_s24 = int_to_ptr.hbm [resolvable:$true] %s37_s24 }
   0x8   :  { %s39_s26 = sshll.u32 %s2903_s25, 4  ;;  %s24_s0 = sshll.u32 %s3335_s1, 4  ;;  %s40_s26 = int_to_ptr.vmem [resolvable:$true] %s39_s26  ;;  %s25_s0 = int_to_ptr.hbm [resolvable:$true] %s24_s0 }
   0x9   :  { %s2904_s29 = smov 64   ;;  %s2905_s30 = smov 4  }
   0xa   :  { %45 = dma.hbm_to_vmem [thread:$0]  %s38_s24, 15360, %s40_s26, [#allocation8], %s2904_s29, %s2904_s29, %s2905_s30  }
   0xb   :  { %s2906_s6 = smov [#allocation5]   ;;  %s2907_s8 = smov 128  }
   0xc   :  { %s26_s7 = sshll.u32 %s2906_s6, 4  ;;  %s2908_s9 = smov 8   ;;  %s27_s7 = int_to_ptr.vmem [resolvable:$true] %s26_s7 }
   0xd   :  { %32 = dma.hbm_to_vmem [thread:$0]  %s25_s0, 1024, %s27_s7, [#allocation6], %s2907_s8, %s2907_s8, %s2908_s9  }
   0xe   :  { %s50_s11 = sshll.u32 %s3337_s3, 4  ;;  %s2909_s12 = smov [#allocation9]   ;;  %s51_s11 = int_to_ptr.hbm [resolvable:$true] %s50_s11 }
   0xf   :  { %s52_s13 = sshll.u32 %s2909_s12, 4  ;;  %s2910_s14 = smov 16   ;;  %s53_s13 = int_to_ptr.vmem [resolvable:$true] %s52_s13 }
  0x10   :  { %s2911_s1 = smov 1  }
  0x11   :  { %58 = dma.hbm_to_vmem [thread:$0]  %s51_s11, 48, %s53_s13, [#allocation8], %s2910_s14, %s2910_s14, %s2911_s1  }
  0x12   :  { %2898 = dma.done.wait [#allocation6], 1024  }
  0x13   :  { %2899 = vsyncadd [#allocation6], 4294966272 }
  0x14   :  { %2900 = dma.done.wait [#allocation8], 15408  }
  0x15   :  { %2901 = vsyncadd [#allocation8], 4294951888  ;;  %v2912_v0 = vmov 0.0   ;;  %s2956_s15 = sld [smem:[#allocation4]]  ;;  %v2673_v1 = vld [vmem:[#allocation7 + $0x38] sm:$0xff]  ;;  %v2672_v4 = vld [vmem:[#allocation7 + $0x30] sm:$0xff] }
  0x16   :  { %77 = vst [vmem:[#allocation2] sm:$0xff] %v2912_v0  ;;  %s2958_s16 = sld [smem:[#allocation4 + $0x1]]  ;;  %v2681_v2 = vld [vmem:[#allocation7 + $0x78] sm:$0xff]  ;;  %736 = vmatpush.bf16.msra.mxu0 %v2673_v1  ;;  %2786 = vmatpush.bf16.msra.mxu3 %v2673_v1  ;;  %v2680_v5 = vld [vmem:[#allocation7 + $0x70] sm:$0xff]  ;;  %v2671_v7 = vld [vmem:[#allocation7 + $0x28] sm:$0xff]  ;;  %v2913_v50 = vmov 0.0|0.0  }
  0x17   :  { %78 = vst [vmem:[#allocation2 + $0x8] sm:$0xff] %v2912_v0  ;;  %s2960_s3 = sld [smem:[#allocation4 + $0x2]]  ;;  %v2689_v3 = vld [vmem:[#allocation7 + $0xb8] sm:$0xff]  ;;  %758 = vmatpush.bf16.msra.mxu1 %v2681_v2  ;;  %v2688_v6 = vld [vmem:[#allocation7 + $0xb0] sm:$0xff]  ;;  %v2679_v8 = vld [vmem:[#allocation7 + $0x68] sm:$0xff]  ;;  %v3022_v51 = vunpack.c.l.b16 %v2913_v50  ;;  %vm445_vm0 = vcmask 1044480  }
  0x18   :  { %79 = vst [vmem:[#allocation2 + $0x10] sm:$0xff] %v2912_v0  ;;  %s2962_s17 = sld [smem:[#allocation4 + $0x3]]  ;;  %780 = vmatpush.bf16.msra.mxu2 %v2689_v3  ;;  %v2687_v9 = vld [vmem:[#allocation7 + $0xa8] sm:$0xff]  ;;  %v2670_v10 = vld [vmem:[#allocation7 + $0x20] sm:$0xff]  ;;  %v2669_v20 = vld [vmem:[#allocation7 + $0x18] sm:$0xff]  ;;  %vm316_vm1 = vcmask 1042432  }
  0x19   :  { %81 = vst [vmem:[#allocation2 + $0x20] sm:$0xff] %v2912_v0  ;;  %s2964_s18 = sld [smem:[#allocation4 + $0x4]]  ;;  %v2678_v13 = vld [vmem:[#allocation7 + $0x60] sm:$0xff]  ;;  %v2677_v22 = vld [vmem:[#allocation7 + $0x58] sm:$0xff]  ;;  %v2668_v28 = vld [vmem:[#allocation7 + $0x10] sm:$0xff]  ;;  %vm357_vm4 = vcmask 1041408  }
  0x1a   :  { %s2966_s19 = sld [smem:[#allocation4 + $0x5]]  ;;  %82 = vst [vmem:[#allocation2 + $0x28] sm:$0xff] %v2912_v0  ;;  %737 = vmatpush.bf16.msra.mxu0 %v2672_v4  ;;  %2787 = vmatpush.bf16.msra.mxu3 %v2672_v4  ;;  %v2686_v16 = vld [vmem:[#allocation7 + $0xa0] sm:$0xff]  ;;  %v2685_v23 = vld [vmem:[#allocation7 + $0x98] sm:$0xff]  ;;  %v2676_v29 = vld [vmem:[#allocation7 + $0x50] sm:$0xff] }
  0x1b   :  { %s2968_s20 = sld [smem:[#allocation4 + $0x6]]  ;;  %759 = vmatpush.bf16.msra.mxu1 %v2680_v5  ;;  %s88_s27 = scalar_lea.vmem [#allocation5], %s2956_s15  ;;  %v2684_v30 = vld [vmem:[#allocation7 + $0x90] sm:$0xff]  ;;  %v2667_v33 = vld [vmem:[#allocation7 + $0x8] sm:$0xff]  ;;  %v2666_v39 = vld [vmem:[#allocation7] sm:$0xff] }
  0x1c   :  { %s2970_s21 = sld [smem:[#allocation4 + $0x7]]  ;;  %781 = vmatpush.bf16.msra.mxu2 %v2688_v6  ;;  %v89_v11 = vld [vmem:[%s88_s27] sm:$0x1]  ;;  %s93_s28 = scalar_lea.vmem [#allocation5], %s2958_s16  ;;  %v2675_v34 = vld [vmem:[#allocation7 + $0x48] sm:$0xff]  ;;  %v2674_v41 = vld [vmem:[#allocation7 + $0x40] sm:$0xff] }
  0x1d   :  { %s2972_s22 = sld [smem:[#allocation4 + $0x8]]  ;;  %v94_v12 = vld [vmem:[%s93_s28] sm:$0x1]  ;;  %90 = vst [vmem:[#allocation2 + $0x8] sm:$0x1] %v89_v11  ;;  %s98_s29 = scalar_lea.vmem [#allocation5], %s2960_s3 }
  0x1e   :  { %s2974_s23 = sld [smem:[#allocation4 + $0x9]]  ;;  %v99_v14 = vld [vmem:[%s98_s29] sm:$0x1]  ;;  %s103_s30 = scalar_lea.vmem [#allocation5], %s2962_s17  ;;  %738 = vmatpush.bf16.msra.mxu0 %v2671_v7  ;;  %2788 = vmatpush.bf16.msra.mxu3 %v2671_v7  ;;  %95 = vst [vmem:[#allocation2 + $0x9] sm:$0x1] %v94_v12 }
  0x1f   :  { %s2976_s24 = sld [smem:[#allocation4 + $0xa]]  ;;  %v104_v15 = vld [vmem:[%s103_s30] sm:$0x1]  ;;  %s108_s6 = scalar_lea.vmem [#allocation5], %s2964_s18  ;;  %760 = vmatpush.bf16.msra.mxu1 %v2679_v8  ;;  %100 = vst [vmem:[#allocation2 + $0xa] sm:$0x1] %v99_v14 }
  0x20   :  { %s2978_s25 = sld [smem:[#allocation4 + $0xb]]  ;;  %v109_v17 = vld [vmem:[%s108_s6] sm:$0x1]  ;;  %782 = vmatpush.bf16.msra.mxu2 %v2687_v9  ;;  %s113_s7 = scalar_lea.vmem [#allocation5], %s2966_s19  ;;  %105 = vst [vmem:[#allocation2 + $0xb] sm:$0x1] %v104_v15 }
  0x21   :  { %s2980_s26 = sld [smem:[#allocation4 + $0xc]]  ;;  %v114_v18 = vld [vmem:[%s113_s7] sm:$0x1]  ;;  %s118_s8 = scalar_lea.vmem [#allocation5], %s2968_s20  ;;  %110 = vst [vmem:[#allocation2 + $0xc] sm:$0x1] %v109_v17 }
  0x22   :  { %s2984_s0 = sld [smem:[#allocation4 + $0xd]]  ;;  %v119_v19 = vld [vmem:[%s118_s8] sm:$0x1]  ;;  %s123_s9 = scalar_lea.vmem [#allocation5], %s2970_s21  ;;  %739 = vmatpush.bf16.msra.mxu0 %v2670_v10  ;;  %2789 = vmatpush.bf16.msra.mxu3 %v2670_v10  ;;  %115 = vst [vmem:[#allocation2 + $0xd] sm:$0x1] %v114_v18 }
  0x23   :  { %v124_v21 = vld [vmem:[%s123_s9] sm:$0x1]  ;;  %s128_s10 = scalar_lea.vmem [#allocation5], %s2972_s22  ;;  %761 = vmatpush.bf16.msra.mxu1 %v2678_v13  ;;  %120 = vst [vmem:[#allocation2 + $0xe] sm:$0x1] %v119_v19  ;;  %s2996_s13 = sld [smem:[#allocation4 + $0xe]] }
  0x24   :  { %v129_v24 = vld [vmem:[%s128_s10] sm:$0x1]  ;;  %s133_s2 = scalar_lea.vmem [#allocation5], %s2974_s23  ;;  %783 = vmatpush.bf16.msra.mxu2 %v2686_v16  ;;  %125 = vst [vmem:[#allocation2 + $0xf] sm:$0x1] %v124_v21  ;;  %s2999_s1 = sld [smem:[#allocation4 + $0xf]] }
  0x25   :  { %v134_v25 = vld [vmem:[%s133_s2] sm:$0x1]  ;;  %s138_s11 = scalar_lea.vmem [#allocation5], %s2976_s24  ;;  %130 = vst [vmem:[#allocation2 + $0x10] sm:$0x1] %v129_v24  ;;  %s3001_s15 = sld [smem:[#allocation4 + $0x80]] }
  0x26   :  { %v139_v26 = vld [vmem:[%s138_s11] sm:$0x1]  ;;  %s143_s12 = scalar_lea.vmem [#allocation5], %s2978_s25  ;;  %740 = vmatpush.bf16.msra.mxu0 %v2669_v20  ;;  %2790 = vmatpush.bf16.msra.mxu3 %v2669_v20  ;;  %135 = vst [vmem:[#allocation2 + $0x11] sm:$0x1] %v134_v25  ;;  %s3004_s3 = sld [smem:[#allocation4 + $0x81]] }
  0x27   :  { %v144_v27 = vld [vmem:[%s143_s12] sm:$0x1]  ;;  %s148_s14 = scalar_lea.vmem [#allocation5], %s2980_s26  ;;  %762 = vmatpush.bf16.msra.mxu1 %v2677_v22  ;;  %140 = vst [vmem:[#allocation2 + $0x12] sm:$0x1] %v139_v26  ;;  %s3006_s17 = sld [smem:[#allocation4 + $0x82]] }
  0x28   :  { %v149_v31 = vld [vmem:[%s148_s14] sm:$0x1]  ;;  %784 = vmatpush.bf16.msra.mxu2 %v2685_v23  ;;  %s153_s16 = scalar_lea.vmem [#allocation5], %s2984_s0  ;;  %145 = vst [vmem:[#allocation2 + $0x13] sm:$0x1] %v144_v27  ;;  %s3008_s18 = sld [smem:[#allocation4 + $0x83]] }
  0x29   :  { %v154_v32 = vld [vmem:[%s153_s16] sm:$0x1]  ;;  %150 = vst [vmem:[#allocation2 + $0x14] sm:$0x1] %v149_v31  ;;  %s3010_s19 = sld [smem:[#allocation4 + $0x84]]  ;;  %v2683_v35 = vld [vmem:[#allocation7 + $0x88] sm:$0xff] }
  0x2a   :  { %741 = vmatpush.bf16.msra.mxu0 %v2668_v28  ;;  %2791 = vmatpush.bf16.msra.mxu3 %v2668_v28  ;;  %155 = vst [vmem:[#allocation2 + $0x15] sm:$0x1] %v154_v32  ;;  %s158_s20 = scalar_lea.vmem [#allocation5], %s2996_s13  ;;  %s3013_s21 = sld [smem:[#allocation4 + $0x85]]  ;;  %v2682_v43 = vld [vmem:[#allocation7 + $0x80] sm:$0xff]  ;;  %v2697_v46 = vld [vmem:[#allocation7 + $0xf8] sm:$0xff] }
  0x2b   :  { %763 = vmatpush.bf16.msra.mxu1 %v2676_v29  ;;  %v159_v36 = vld [vmem:[%s158_s20] sm:$0x1]  ;;  %s163_s22 = scalar_lea.vmem [#allocation5], %s2999_s1  ;;  %v248_v38 = vld [vmem:[#allocation2 + $0x8] sm:$0xff]  ;;  %s169_s23 = scalar_lea.vmem [#allocation5], %s3001_s15  ;;  %v2696_v8 = vld [vmem:[#allocation7 + $0xf0] sm:$0xff] }
  0x2c   :  { %785 = vmatpush.bf16.msra.mxu2 %v2684_v30  ;;  %160 = vst [vmem:[#allocation2 + $0x16] sm:$0x1] %v159_v36  ;;  %v164_v37 = vld [vmem:[%s163_s22] sm:$0x1]  ;;  %s174_s24 = scalar_lea.vmem [#allocation5], %s3004_s3  ;;  %v256_v45 = vpack.c.bf16 %v248_v38, %v248_v38  ;;  %s2172_s0 = sld [smem:[#allocation4 + $0x86]]  ;;  %v3050_v36 = vpack.c.b16 %v3022_v51, %v3022_v51 }
  0x2d   :  { %165 = vst [vmem:[#allocation2 + $0x17] sm:$0x1] %v164_v37  ;;  %v170_v40 = vld [vmem:[%s169_s23] sm:$0x1]  ;;  %s179_s25 = scalar_lea.vmem [#allocation5], %s3006_s17  ;;  %s2173_s29 = sld [smem:[#allocation4 + $0x87]] }
  0x2e   :  { %742 = vmatpush.bf16.msra.mxu0 %v2667_v33  ;;  %2792 = vmatpush.bf16.msra.mxu3 %v2667_v33  ;;  %171 = vst [vmem:[#allocation2 + $0x20] sm:$0x1] %v170_v40  ;;  %v175_v42 = vld [vmem:[%s174_s24] sm:$0x1]  ;;  %s184_s26 = scalar_lea.vmem [#allocation5], %s3008_s18  ;;  %v271_v52 = vunpack.c.l.b16 %v256_v45  ;;  %s2174_s30 = sld [smem:[#allocation4 + $0x88]] }
  0x2f   :  { %764 = vmatpush.bf16.msra.mxu1 %v2675_v34  ;;  %176 = vst [vmem:[#allocation2 + $0x21] sm:$0x1] %v175_v42  ;;  %v180_v44 = vld [vmem:[%s179_s25] sm:$0x1]  ;;  %s189_s27 = scalar_lea.vmem [#allocation5], %s3010_s19  ;;  %s2175_s6 = sld [smem:[#allocation4 + $0x89]] }
  0x30   :  { %786 = vmatpush.bf16.msra.mxu2 %v2683_v35  ;;  %181 = vst [vmem:[#allocation2 + $0x22] sm:$0x1] %v180_v44  ;;  %v185_v47 = vld [vmem:[%s184_s26] sm:$0x1]  ;;  %s194_s28 = scalar_lea.vmem [#allocation5], %s3013_s21  ;;  %s2176_s7 = sld [smem:[#allocation4 + $0x8a]]  ;;  %v3025_v56 = vpack.c.b16 %v271_v52, %v3022_v51 }
  0x31   :  { %186 = vst [vmem:[#allocation2 + $0x23] sm:$0x1] %v185_v47  ;;  %v190_v48 = vld [vmem:[%s189_s27] sm:$0x1]  ;;  %s2177_s8 = sld [smem:[#allocation4 + $0x8b]]  ;;  %v2704_v10 = vld [vmem:[#allocation7 + $0x130] sm:$0xff] }
  0x32   :  { %743 = vmatpush.bf16.msra.mxu0 %v2666_v39  ;;  %2793 = vmatpush.bf16.msra.mxu3 %v2666_v39  ;;  %191 = vst [vmem:[#allocation2 + $0x24] sm:$0x1] %v190_v48  ;;  %v195_v49 = vld [vmem:[%s194_s28] sm:$0x1]  ;;  %s2178_s9 = sld [smem:[#allocation4 + $0x8c]]  ;;  %s199_s10 = scalar_lea.vmem [#allocation5], %s2172_s0 }
  0x33   :  { %765 = vmatpush.bf16.msra.mxu1 %v2674_v41  ;;  %196 = vst [vmem:[#allocation2 + $0x25] sm:$0x1] %v195_v49  ;;  %v200_v57 = vld [vmem:[%s199_s10] sm:$0x1]  ;;  %v446_v59 = vrot.slane %v3025_v56, 3  ;;  %s2179_s2 = sld [smem:[#allocation4 + $0x8d]] }
  0x34   :  { %787 = vmatpush.bf16.msra.mxu2 %v2682_v43  ;;  %v249_v53 = vld [vmem:[#allocation2 + $0x10] sm:$0xff]  ;;  %201 = vst [vmem:[#allocation2 + $0x26] sm:$0x1] %v200_v57  ;;  %s204_s11 = scalar_lea.vmem [#allocation5], %s2173_s29  ;;  %s209_s12 = scalar_lea.vmem [#allocation5], %s2174_s30  ;;  %v2705_v7 = vld [vmem:[#allocation7 + $0x138] sm:$0xff] }
  0x35   :  { %v257_v54 = vpack.c.bf16 %v249_v53, %v249_v53  ;;  %v205_v60 = vld [vmem:[%s204_s11] sm:$0x1]  ;;  %s214_s13 = scalar_lea.vmem [#allocation5], %s2175_s6  ;;  %s2180_s3 = sld [smem:[#allocation4 + $0x8e]]  ;;  %v2695_v11 = vld [vmem:[#allocation7 + $0xe8] sm:$0xff]  ;;  %v2694_v18 = vld [vmem:[#allocation7 + $0xe0] sm:$0xff] }
  0x36   :  { %802 = vmatpush.bf16.msrb.mxu3 %v2697_v46  ;;  %206 = vst [vmem:[#allocation2 + $0x27] sm:$0x1] %v205_v60  ;;  %v210_v62 = vld [vmem:[%s209_s12] sm:$0x1]  ;;  %s219_s14 = scalar_lea.vmem [#allocation5], %s2176_s7  ;;  %s2181_s17 = sld [smem:[#allocation4 + $0x8f]]  ;;  %824 = vmatpush.bf16.msrb.mxu0 %v2705_v7 }
  0x37   :  { %v272_v55 = vunpack.c.l.b16 %v257_v54  ;;  %211 = vst [vmem:[#allocation2 + $0x28] sm:$0x1] %v210_v62  ;;  %v215_v63 = vld [vmem:[%s214_s13] sm:$0x1]  ;;  %s224_s1 = scalar_lea.vmem [#allocation5], %s2177_s8  ;;  %v2703_v17 = vld [vmem:[#allocation7 + $0x128] sm:$0xff] }
  0x38   :  { %216 = vst [vmem:[#allocation2 + $0x29] sm:$0x1] %v215_v63  ;;  %v220_v1 = vld [vmem:[%s219_s14] sm:$0x1]  ;;  %s229_s15 = scalar_lea.vmem [#allocation5], %s2178_s9  ;;  %v285_v19 = vshll.u32 %v3025_v56, 16 }
  0x39   :  { %v3028_v58 = vpack.c.b16 %v3022_v51, %v272_v55  ;;  %221 = vst [vmem:[#allocation2 + $0x2a] sm:$0x1] %v220_v1  ;;  %v225_v2 = vld [vmem:[%s224_s1] sm:$0x1]  ;;  %s234_s16 = scalar_lea.vmem [#allocation5], %s2179_s2  ;;  %v3035_v6 = vpack.c.b16 %v272_v55, %v271_v52  ;;  %v2702_v24 = vld [vmem:[#allocation7 + $0x120] sm:$0xff] }
  0x3a   :  { %226 = vst [vmem:[#allocation2 + $0x2b] sm:$0x1] %v225_v2  ;;  %v230_v3 = vld [vmem:[%s229_s15] sm:$0x1]  ;;  %803 = vmatpush.bf16.msrb.mxu3 %v2696_v8  ;;  %825 = vmatpush.bf16.msrb.mxu0 %v2704_v10  ;;  %v283_v26 = vshrl.u32 %v3025_v56, 16  ;;  %v287_v27 = vrot.slane %v285_v19, 1 }
  0x3b   :  { %v447_v61 = vrot.slane %v3028_v58, 3  ;;  %231 = vst [vmem:[#allocation2 + $0x2c] sm:$0x1] %v230_v3  ;;  %v235_v4 = vld [vmem:[%s234_s16] sm:$0x1]  ;;  %v317_v13 = vrot.slane %v3035_v6, 5 }
  0x3c   :  { %236 = vst [vmem:[#allocation2 + $0x2d] sm:$0x1] %v235_v4  ;;  %s239_s18 = scalar_lea.vmem [#allocation5], %s2180_s3  ;;  %s244_s19 = scalar_lea.vmem [#allocation5], %s2181_s17  ;;  %v2693_v25 = vld [vmem:[#allocation7 + $0xd8] sm:$0xff]  ;;  %v290_v28 = vshll.u32 %v3028_v58, 16  ;;  %v288_v34 = vor.u32 %v287_v27, %v283_v26 }
  0x3d   :  { %v448_v0 = vsel %vm445_vm0, %v446_v59, %v447_v61  ;;  %v251_v5 = vld [vmem:[#allocation2 + $0x20] sm:$0xff]  ;;  %v240_v15 = vld [vmem:[%s239_s18] sm:$0x1]  ;;  %v452_v21 = vrot.slane %v317_v13, 3  ;;  %vm281_vm2 = vsmask.f32 7424 }
  0x3e   :  { %744 = vmatmul.bf16.vlgmr.msra.gmra.mxu0 %v448_v0  ;;  %v259_v9 = vpack.c.bf16 %v251_v5, %v251_v5  ;;  %241 = vst [vmem:[#allocation2 + $0x2e] sm:$0x1] %v240_v15  ;;  %v245_v16 = vld [vmem:[%s244_s19] sm:$0x1]  ;;  %804 = vmatpush.bf16.msrb.mxu3 %v2695_v11  ;;  %v2692_v32 = vld [vmem:[#allocation7 + $0xd0] sm:$0xff]  ;;  %v294_v35 = vshrl.u32 %v3028_v58, 16 }
  0x3f   :  { %246 = vst [vmem:[#allocation2 + $0x2f] sm:$0x1] %v245_v16  ;;  %826 = vmatpush.bf16.msrb.mxu0 %v2703_v17  ;;  %v2701_v31 = vld [vmem:[#allocation7 + $0x118] sm:$0xff]  ;;  %v292_v37 = vrot.slane %v290_v28, 1  ;;  %v327_v38 = vshrl.u32 %v3035_v6, 16  ;;  %v330_v39 = vshll.u32 %v3035_v6, 16 }
  0x40   :  { %v274_v12 = vunpack.c.l.b16 %v259_v9  ;;  %v2700_v43 = vld [vmem:[#allocation7 + $0x110] sm:$0xff]  ;;  %v2691_v44 = vld [vmem:[#allocation7 + $0xc8] sm:$0xff]  ;;  %v471_v48 = vrot.slane %v3050_v36, 3  ;;  %v2690_v60 = vld [vmem:[#allocation7 + $0xc0] sm:$0xff]  ;;  %v358_v58 = vrot.slane %v3035_v6, 6 }
  0x41   :  { %v293_v46 = vsel %vm281_vm2, %v288_v34, %v292_v37  ;;  %v296_v49 = vor.u32 %v294_v35, %v292_v37  ;;  %v329_v50 = vrot.slane %v327_v38, 5  ;;  %v332_v52 = vrot.slane %v330_v39, 6  ;;  %v2699_v59 = vld [vmem:[#allocation7 + $0x108] sm:$0xff]  ;;  %v2698_v10 = vld [vmem:[#allocation7 + $0x100] sm:$0xff] }
  0x42   :  { %v3039_v14 = vpack.c.b16 %v274_v12, %v3022_v51  ;;  %805 = vmatpush.bf16.msrb.mxu3 %v2694_v18  ;;  %v449_v2 = vrot.slane %v293_v46, 3  ;;  %vm325_vm3 = vsmask.f32 2304  ;;  %v310_v34 = vshrl.u32 %v3050_v36, 16 }
  0x43   :  { %827 = vmatpush.bf16.msrb.mxu0 %v2702_v24  ;;  %v333_v5 = vor.u32 %v332_v52, %v329_v50  ;;  %v363_v46 = vrot.slane %v3050_v36, 6 }
  0x44   :  { %v318_v20 = vrot.slane %v3039_v14, 5  ;;  %v335_v40 = vshrl.u32 %v3039_v14, 16  ;;  %v338_v42 = vshll.u32 %v3039_v14, 16 }
  0x45   :  { %v455_v6 = vrot.slane %v333_v5, 3 }
  0x46   :  { %v319_v22 = vsel %vm316_vm1, %v317_v13, %v318_v20  ;;  %v252_v30 = vld [vmem:[#allocation2 + $0x28] sm:$0xff]  ;;  %806 = vmatpush.bf16.msrb.mxu3 %v2693_v25  ;;  %v337_v53 = vrot.slane %v335_v40, 5  ;;  %v340_v57 = vrot.slane %v338_v42, 6 }
  0x47   :  { %v453_v23 = vrot.slane %v319_v22, 3  ;;  %v260_v33 = vpack.c.bf16 %v252_v30, %v252_v30  ;;  %828 = vmatpush.bf16.msrb.mxu0 %v2701_v31 }
  0x48   :  { %v341_v7 = vor.u32 %v340_v57, %v337_v53 }
  0x49   :  { %v454_v29 = vsel %vm445_vm0, %v452_v21, %v453_v23  ;;  %v275_v41 = vunpack.c.l.b16 %v260_v33 }
  0x4a   :  { %788 = vmatmul.bf16.vlgmr.msra.gmra.mxu2 %v454_v29  ;;  %807 = vmatpush.bf16.msrb.mxu3 %v2692_v32  ;;  %v342_v15 = vsel %vm325_vm3, %v333_v5, %v341_v7  ;;  %v2710_v5 = vld [vmem:[#allocation7 + $0x160] sm:$0xff] }
  0x4b   :  { %v279_v45 = vpack.c.b16 %v275_v41, %v274_v12  ;;  %v3058_v47 = vpack.c.b16 %v3022_v51, %v275_v41  ;;  %829 = vmatpush.bf16.msrb.mxu0 %v2700_v43  ;;  %v306_v12 = vshll.u32 %v3050_v36, 16  ;;  %v456_v19 = vrot.slane %v342_v15, 3  ;;  %v2729_v15 = vld [vmem:[#allocation7 + $0x1f8] sm:$0xff] }
  0x4d   :  { %v298_v54 = vshll.u32 %v279_v45, 16  ;;  %v461_v55 = vrot.slane %v279_v45, 3  ;;  %v320_v56 = vrot.slane %v3058_v47, 5  ;;  %v302_v11 = vshrl.u32 %v279_v45, 16 }
  0x4e   :  { %808 = vmatpush.bf16.msrb.mxu3 %v2691_v44  ;;  %v3077_v18 = vrot.slane %v306_v12, 1  ;;  %v344_v21 = vshrl.u32 %v3058_v47, 16  ;;  %v347_v22 = vshll.u32 %v3058_v47, 16  ;;  %v457_v24 = vsel %vm445_vm0, %v455_v6, %v456_v19  ;;  %v2708_v6 = vld [vmem:[#allocation7 + $0x150] sm:$0xff] }
  0x4f   :  { %v300_v62 = vrot.slane %v298_v54, 1  ;;  %v472_v63 = vsel %vm445_vm0, %v461_v55, %v471_v48  ;;  %v462_v0 = vsel %vm445_vm0, %v447_v61, %v461_v55  ;;  %v321_v1 = vsel %vm316_vm1, %v318_v20, %v320_v56  ;;  %830 = vmatpush.bf16.msrb.mxu0 %v2699_v59 }
  0x50   :  { %753 = vmatmul.bf16.vlgmr.msra.gmra.mxu3 %v472_v63  ;;  %749 = vmatmul.bf16.gmra.mxu0 %v462_v0  ;;  %v465_v3 = vrot.slane %v321_v1, 3  ;;  %v359_v61 = vrot.slane %v3039_v14, 6  ;;  %v458_v14 = vrot.slane %v358_v58, 3  ;;  %v475_v27 = vrot.slane %v320_v56, 3  ;;  %v2712_v1 = vld [vmem:[#allocation7 + $0x170] sm:$0xff] }
  0x51   :  { %v301_v4 = vsel %vm281_vm2, %v296_v49, %v300_v62  ;;  %v304_v17 = vor.u32 %v302_v11, %v300_v62  ;;  %v346_v28 = vrot.slane %v344_v21, 5  ;;  %v349_v29 = vrot.slane %v347_v22, 6  ;;  %v3116_v22 = vld [vmem:[%s3338_s4] ss:$0 sm:$0xff] }
  0x52   :  { %v450_v8 = vrot.slane %v301_v4, 3  ;;  %v466_v9 = vsel %vm445_vm0, %v453_v23, %v465_v3  ;;  %809 = vmatpush.bf16.msrb.mxu3 %v2690_v60  ;;  %v360_v16 = vsel %vm357_vm4, %v358_v58, %v359_v61  ;;  %v476_v31 = vsel %vm445_vm0, %v465_v3, %v475_v27  ;;  %v2713_v60 = vld [vmem:[#allocation7 + $0x178] sm:$0xff]  ;;  %v2711_v3 = vld [vmem:[#allocation7 + $0x168] sm:$0xff] }
  0x53   :  { %831 = vmatpush.bf16.msrb.mxu0 %v2698_v10  ;;  %v459_v20 = vrot.slane %v360_v16, 3  ;;  %v309_v23 = vsel %vm281_vm2, %v304_v17, %v3077_v18  ;;  %v350_v32 = vor.u32 %v349_v29, %v346_v28  ;;  %v361_v33 = vrot.slane %v3058_v47, 6  ;;  %1355 = vmatpush.bf16.msrb.mxu1 %v2713_v60  ;;  %v2709_v10 = vld [vmem:[#allocation7 + $0x158] sm:$0xff]  ;;  %v3111_v17 = vld [vmem:[#allocation9] ss:$0 sm:$0xff] }
  0x54   :  { %v451_v13 = vsel %vm445_vm0, %v449_v2, %v450_v8  ;;  %v463_v26 = vrot.slane %v309_v23, 3  ;;  %v3092_v40 = vor.u32 %v310_v34, %v3077_v18  ;;  %v355_v45 = vrot.slane %v306_v12, 6  ;;  %v2707_v23 = vld [vmem:[#allocation7 + $0x148] sm:$0xff] }
  0x55   :  { %766 = vmatmul.bf16.vlgmr.msra.gmra.mxu1 %v451_v13  ;;  %v460_v25 = vsel %vm445_vm0, %v458_v14, %v459_v20  ;;  %v351_v35 = vsel %vm325_vm3, %v341_v7, %v350_v32  ;;  %v362_v37 = vsel %vm357_vm4, %v359_v61, %v361_v33  ;;  %v364_v49 = vsel %vm357_vm4, %v361_v33, %v363_v46 }
  0x56   :  { %v464_v30 = vsel %vm445_vm0, %v450_v8, %v463_v26  ;;  %v467_v38 = vrot.slane %v351_v35, 3  ;;  %v469_v39 = vrot.slane %v362_v37, 3  ;;  %v473_v43 = vrot.slane %v3092_v40, 3  ;;  %1399 = vmatpush.bf16.msra.mxu3 %v2729_v15  ;;  %v2721_v35 = vld [vmem:[#allocation7 + $0x1b8] sm:$0xff]  ;;  %v2706_v37 = vld [vmem:[#allocation7 + $0x140] sm:$0xff] }
  0x57   :  { %v356_v47 = vsel %vm325_vm3, %v350_v32, %v355_v45  ;;  %v479_v52 = vrot.slane %v364_v49, 3  ;;  %1356 = vmatpush.bf16.msrb.mxu1 %v2712_v1  ;;  %v2736_v32 = vld [vmem:[#allocation7 + $0x230] sm:$0xff]  ;;  %1377 = vmatpush.bf16.msrb.mxu2 %v2721_v35  ;;  %v2745_v45 = vld [vmem:[#allocation7 + $0x278] sm:$0xff] }
  0x58   :  { %v468_v41 = vsel %vm445_vm0, %v456_v19, %v467_v38  ;;  %v470_v42 = vsel %vm445_vm0, %v459_v20, %v469_v39  ;;  %v474_v44 = vsel %vm445_vm0, %v463_v26, %v473_v43  ;;  %v477_v50 = vrot.slane %v356_v47, 3  ;;  %v2737_v19 = vld [vmem:[#allocation7 + $0x238] sm:$0xff]  ;;  %v2728_v20 = vld [vmem:[#allocation7 + $0x1f0] sm:$0xff] }
  0x59   :  { %v480_v54 = vsel %vm445_vm0, %v469_v39, %v479_v52  ;;  %1421 = vmatpush.bf16.msra.mxu0 %v2737_v19  ;;  %v2726_v39 = vld [vmem:[#allocation7 + $0x1e0] sm:$0xff]  ;;  %v2733_v1 = vld [vmem:[#allocation7 + $0x218] sm:$0xff] }
  0x5a   :  { %793 = vmatmul.bf16.gmra.mxu2 %v466_v9  ;;  %v478_v53 = vsel %vm445_vm0, %v467_v38, %v477_v50  ;;  %1400 = vmatpush.bf16.msra.mxu3 %v2728_v20  ;;  %v2725_v50 = vld [vmem:[#allocation7 + $0x1d8] sm:$0xff]  ;;  %v2734_v52 = vld [vmem:[#allocation7 + $0x220] sm:$0xff] }
  0x5b   :  { %1357 = vmatpush.bf16.msrb.mxu1 %v2711_v3  ;;  %v2717_v15 = vld [vmem:[#allocation7 + $0x198] sm:$0xff] }
  0x5d   :  { %1422 = vmatpush.bf16.msra.mxu0 %v2736_v32 }
  0x5f   :  { %1358 = vmatpush.bf16.msrb.mxu1 %v2710_v5  ;;  %v2743_v5 = vld [vmem:[#allocation7 + $0x268] sm:$0xff] }
  0x60   :  { %810 = vmatmul.bf16.vlgmr.msrb.gmra.mxu3 %v457_v24  ;;  %832 = vmatmul.bf16.vlgmr.msrb.gmra.mxu0 %v460_v25 }
  0x63   :  { %1359 = vmatpush.bf16.msrb.mxu1 %v2709_v10  ;;  %v2723_v10 = vld [vmem:[#allocation7 + $0x1c8] sm:$0xff] }
  0x65   :  { %771 = vmatmul.bf16.gmra.mxu1 %v464_v30 }
  0x67   :  { %1360 = vmatpush.bf16.msrb.mxu1 %v2708_v6 }
  0x6a   :  { %797 = vmatmul.bf16.gmra.mxu2 %v476_v31  ;;  %v2727_v31 = vld [vmem:[#allocation7 + $0x1e8] sm:$0xff] }
  0x6b   :  { %1361 = vmatpush.bf16.msrb.mxu1 %v2707_v23  ;;  %1401 = vmatpush.bf16.msra.mxu3 %v2727_v31  ;;  %v2731_v23 = vld [vmem:[#allocation7 + $0x208] sm:$0xff] }
  0x6f   :  { %1362 = vmatpush.bf16.msrb.mxu1 %v2706_v37  ;;  %1402 = vmatpush.bf16.msra.mxu3 %v2726_v39 }
  0x70   :  { %815 = vmatmul.bf16.gmra.mxu3 %v468_v41  ;;  %837 = vmatmul.bf16.gmra.mxu0 %v470_v42  ;;  %v2735_v41 = vld [vmem:[#allocation7 + $0x228] sm:$0xff] }
  0x71   :  { %1423 = vmatpush.bf16.msra.mxu0 %v2735_v41 }
  0x73   :  { %1443 = vmatpush.bf16.msra.mxu1 %v2745_v45  ;;  %1403 = vmatpush.bf16.msra.mxu3 %v2725_v50 }
  0x75   :  { %775 = vmatmul.bf16.gmra.mxu1 %v474_v44  ;;  %v2720_v44 = vld [vmem:[#allocation7 + $0x1b0] sm:$0xff]  ;;  %1424 = vmatpush.bf16.msra.mxu0 %v2734_v52 }
  0x76   :  { %1378 = vmatpush.bf16.msrb.mxu2 %v2720_v44  ;;  %v2714_v44 = vld [vmem:[#allocation7 + $0x180] sm:$0xff] }
  0x79   :  { %1425 = vmatpush.bf16.msra.mxu0 %v2733_v1 }
  0x80   :  { %819 = vmatmul.bf16.gmra.mxu3 %v478_v53  ;;  %841 = vmatmul.bf16.gmra.mxu0 %v480_v54 }
  0xbb   :  { %v745_v55 = vpop.f32.mrf.mxu0 }
  0xc3   :  { %v747_v56 = vpop.f32.mrf.mxu0 }
  0xcd   :  { %v789_v57 = vpop.f32.mrf.mxu2  ;;  %v750_v59 = vpop.f32.mrf.mxu0 }
  0xd2   :  { %v767_v63 = vpop.f32.mrf.mxu1 }
  0xd3   :  { %v3105_v0 = vpop.f32.mrf.mxu3  ;;  %v768_v58 = vadd.f32 %v767_v63, %v745_v55  ;;  %v2719_v55 = vld [vmem:[#allocation7 + $0x1a8] sm:$0xff]  ;;  %v2724_v63 = vld [vmem:[#allocation7 + $0x1d0] sm:$0xff] }
  0xd4   :  { %1379 = vmatpush.bf16.msrb.mxu2 %v2719_v55  ;;  %1404 = vmatpush.bf16.msra.mxu3 %v2724_v63 }
  0xd5   :  { %v791_v62 = vpop.f32.mrf.mxu2  ;;  %v3107_v2 = vpop.f32.mrf.mxu0  ;;  %v790_v11 = vadd.f32 %v789_v57, %v768_v58  ;;  %v2732_v58 = vld [vmem:[#allocation7 + $0x210] sm:$0xff] }
  0xd6   :  { %1426 = vmatpush.bf16.msra.mxu0 %v2732_v58 }
  0xd8   :  { %1405 = vmatpush.bf16.msra.mxu3 %v2723_v10 }
  0xda   :  { %v769_v7 = vpop.f32.mrf.mxu1  ;;  %1427 = vmatpush.bf16.msra.mxu0 %v2731_v23 }
  0xdb   :  { %v756_v8 = vpop.f32.mrf.mxu3  ;;  %v770_v24 = vadd.f32 %v769_v7, %v747_v56  ;;  %v2744_v56 = vld [vmem:[#allocation7 + $0x270] sm:$0xff] }
  0xdc   :  { %1444 = vmatpush.bf16.msra.mxu1 %v2744_v56 }
  0xdd   :  { %v794_v4 = vpop.f32.mrf.mxu2  ;;  %v833_v9 = vpop.f32.mrf.mxu0  ;;  %v792_v27 = vadd.f32 %v791_v62, %v770_v24 }
  0xde   :  { %v2718_v4 = vld [vmem:[#allocation7 + $0x1a0] sm:$0xff] }
  0xdf   :  { %1380 = vmatpush.bf16.msrb.mxu2 %v2718_v4 }
  0xe0   :  { %1445 = vmatpush.bf16.msra.mxu1 %v2743_v5 }
  0xe2   :  { %v772_v12 = vpop.f32.mrf.mxu1 }
  0xe3   :  { %v811_v13 = vpop.f32.mrf.mxu3  ;;  %1381 = vmatpush.bf16.msrb.mxu2 %v2717_v15 }
  0xe4   :  { %v812_v16 = vadd.f32 %v811_v13, %v790_v11 }
  0xe5   :  { %v3109_v61 = vpop.f32.mrf.mxu2  ;;  %v835_v14 = vpop.f32.mrf.mxu0 }
  0xe6   :  { %v834_v21 = vadd.f32 %v833_v9, %v812_v16  ;;  %v2742_v16 = vld [vmem:[#allocation7 + $0x260] sm:$0xff] }
  0xe7   :  { %1446 = vmatpush.bf16.msra.mxu1 %v2742_v16 }
  0xe8   :  { %v850_v25 = vmul.f32 %v3111_v17, %v834_v21  ;;  %v2722_v21 = vld [vmem:[#allocation7 + $0x1c0] sm:$0xff] }
  0xe9   :  { %1406 = vmatpush.bf16.msra.mxu3 %v2722_v21 }
  0xea   :  { %v773_v28 = vpop.f32.mrf.mxu1  ;;  %v858_v29 = vadd.f32 %v3116_v22, %v850_v25  ;;  %v2716_v25 = vld [vmem:[#allocation7 + $0x190] sm:$0xff] }
  0xeb   :  { %v813_v30 = vpop.f32.mrf.mxu3  ;;  %v774_v7 = vadd.f32 %v773_v28, %v3107_v2  ;;  %1382 = vmatpush.bf16.msrb.mxu2 %v2716_v25 }
  0xec   :  { %v862_v33 = vmax.f32 %v858_v29, 0.0  ;;  %v814_v34 = vadd.f32 %v813_v30, %v792_v27  ;;  %v2741_v27 = vld [vmem:[#allocation7 + $0x258] sm:$0xff]  ;;  %v2730_v30 = vld [vmem:[#allocation7 + $0x200] sm:$0xff] }
  0xed   :  { %v3119_v26 = vpop.f32.mrf.mxu2  ;;  %v838_v38 = vpop.f32.mrf.mxu0  ;;  %v796_v11 = vadd.f32 %v3109_v61, %v774_v7  ;;  %1447 = vmatpush.bf16.msra.mxu1 %v2741_v27  ;;  %1428 = vmatpush.bf16.msra.mxu0 %v2730_v30 }
  0xee   :  { %v836_v42 = vadd.f32 %v835_v14, %v814_v34  ;;  %v3123_v49 = vpack.c.bf16 %v862_v33, %v862_v33  ;;  %v2715_v33 = vld [vmem:[#allocation7 + $0x188] sm:$0xff]  ;;  %v2740_v34 = vld [vmem:[#allocation7 + $0x250] sm:$0xff] }
  0xef   :  { %1383 = vmatpush.bf16.msrb.mxu2 %v2715_v33 }
  0xf0   :  { %v851_v46 = vmul.f32 %v3111_v17, %v836_v42  ;;  %v894_v60 = vunpack.c.l.b16 %v3123_v49 }
  0xf1   :  { %1448 = vmatpush.bf16.msra.mxu1 %v2740_v34 }
  0xf2   :  { %v776_v53 = vpop.f32.mrf.mxu1  ;;  %v859_v54 = vadd.f32 %v3116_v22, %v851_v46  ;;  %v3129_v9 = vpack.c.b16 %v894_v60, %v3022_v51  ;;  %v2739_v46 = vld [vmem:[#allocation7 + $0x248] sm:$0xff] }
  0xf3   :  { %v816_v57 = vpop.f32.mrf.mxu3  ;;  %v777_v28 = vadd.f32 %v776_v53, %v3105_v0  ;;  %1384 = vmatpush.bf16.msrb.mxu2 %v2714_v44 }
  0xf4   :  { %v863_v59 = vmax.f32 %v859_v54, 0.0  ;;  %v1065_v19 = vrot.slane %v3129_v9, 3  ;;  %v907_v57 = vshll.u32 %v3129_v9, 16  ;;  %v905_v16 = vshrl.u32 %v3129_v9, 16 }
  0xf5   :  { %v800_v47 = vpop.f32.mrf.mxu2  ;;  %v839_v62 = vpop.f32.mrf.mxu0  ;;  %v799_v31 = vadd.f32 %v3119_v26, %v777_v28  ;;  %1449 = vmatpush.bf16.msra.mxu1 %v2739_v46 }
  0xf6   :  { %v880_v3 = vpack.c.bf16 %v863_v59, %v863_v59  ;;  %v909_v58 = vrot.slane %v907_v57, 1 }
  0xf8   :  { %v895_v8 = vunpack.c.l.b16 %v880_v3 }
  0xfa   :  { %v778_v12 = vpop.f32.mrf.mxu1  ;;  %v3133_v13 = vpack.c.b16 %v3022_v51, %v895_v8  ;;  %v3144_v37 = vpack.c.b16 %v895_v8, %v894_v60 }
  0xfb   :  { %v817_v6 = vpop.f32.mrf.mxu3 }
  0xfc   :  { %v818_v2 = vadd.f32 %v817_v6, %v796_v11  ;;  %v1066_v14 = vrot.slane %v3133_v13, 3  ;;  %v947_v26 = vshrl.u32 %v3144_v37, 16  ;;  %v950_v45 = vshll.u32 %v3144_v37, 16 }
  0xfd   :  { %v842_v20 = vpop.f32.mrf.mxu0  ;;  %v938_v54 = vrot.slane %v3144_v37, 5  ;;  %v912_v63 = vshll.u32 %v3133_v13, 16 }
  0xfe   :  { %v840_v61 = vadd.f32 %v839_v62, %v818_v2  ;;  %v1067_v24 = vsel %vm445_vm0, %v1065_v19, %v1066_v14  ;;  %v949_v55 = vrot.slane %v947_v26, 5  ;;  %v952_v56 = vrot.slane %v950_v45, 6  ;;  %v2811_v26 = vld [vmem:[#allocation2] sm:$0xff] }
  0xff   :  { %1363 = vmatmul.bf16.vlgmr.msrb.gmra.mxu1 %v1067_v24  ;;  %v1071_v7 = vrot.slane %v938_v54, 3  ;;  %v914_v6 = vrot.slane %v912_v63, 1  ;;  %v916_v24 = vshrl.u32 %v3133_v13, 16  ;;  %v885_v13 = vpack.c.bf16 %v2811_v26, %v2811_v26 }
 0x100   :  { %v852_v29 = vmul.f32 %v3111_v17, %v840_v61  ;;  %v953_v10 = vor.u32 %v952_v56, %v949_v55  ;;  %v910_v61 = vor.u32 %v909_v58, %v905_v16  ;;  %v977_v63 = vrot.slane %v3144_v37, 6 }
 0x101   :  { %v918_v30 = vor.u32 %v916_v24, %v914_v6 }
 0x102   :  { %v860_v32 = vadd.f32 %v3116_v22, %v852_v29  ;;  %v1074_v21 = vrot.slane %v953_v10, 3  ;;  %v915_v9 = vsel %vm281_vm2, %v910_v61, %v914_v6 }
 0x103   :  { %v820_v35 = vpop.f32.mrf.mxu3 }
 0x104   :  { %v864_v38 = vmax.f32 %v860_v32, 0.0  ;;  %v821_v39 = vadd.f32 %v820_v35, %v799_v31 }
 0x105   :  { %v844_v41 = vpop.f32.mrf.mxu0 }
 0x106   :  { %v843_v0 = vadd.f32 %v842_v20, %v821_v39  ;;  %v882_v42 = vpack.c.bf16 %v864_v38, %v864_v38  ;;  %v1068_v39 = vrot.slane %v915_v9, 3 }
 0x108   :  { %v853_v47 = vmul.f32 %v3111_v17, %v843_v0  ;;  %v897_v49 = vunpack.c.l.b16 %v882_v42 }
 0x10a   :  { %v861_v50 = vadd.f32 %v3116_v22, %v853_v47  ;;  %v3151_v52 = vpack.c.b16 %v897_v49, %v3022_v51  ;;  %v2738_v22 = vld [vmem:[#allocation7 + $0x240] sm:$0xff] }
 0x10b   :  { %v822_v53 = vpop.f32.mrf.mxu3  ;;  %1450 = vmatpush.bf16.msra.mxu1 %v2738_v22 }
 0x10c   :  { %v865_v59 = vmax.f32 %v861_v50, 0.0  ;;  %v939_v60 = vrot.slane %v3151_v52, 5  ;;  %v955_v17 = vshrl.u32 %v3151_v52, 16  ;;  %v958_v62 = vshll.u32 %v3151_v52, 16 }
 0x10e   :  { %v940_v1 = vsel %vm316_vm1, %v938_v54, %v939_v60  ;;  %v957_v3 = vrot.slane %v955_v17, 5  ;;  %v960_v4 = vrot.slane %v958_v62, 6  ;;  %v883_v5 = vpack.c.bf16 %v865_v59, %v865_v59 }
 0x10f   :  { %v1072_v8 = vrot.slane %v940_v1, 3  ;;  %v978_v62 = vrot.slane %v3151_v52, 6 }
 0x110   :  { %v961_v11 = vor.u32 %v960_v4, %v957_v3  ;;  %v898_v12 = vunpack.c.l.b16 %v883_v5  ;;  %v1077_v5 = vrot.slane %v977_v63, 3 }
 0x111   :  { %v1073_v15 = vsel %vm445_vm0, %v1071_v7, %v1072_v8 }
 0x112   :  { %1407 = vmatmul.bf16.vlgmr.msra.gmra.mxu3 %v1073_v15  ;;  %v962_v2 = vsel %vm325_vm3, %v953_v10, %v961_v11  ;;  %v902_v19 = vpack.c.b16 %v898_v12, %v897_v49  ;;  %v3164_v20 = vpack.c.b16 %v3022_v51, %v898_v12  ;;  %v3179_v49 = vunpack.c.l.b16 %v885_v13 }
 0x113   :  { %v1075_v23 = vrot.slane %v962_v2, 3  ;;  %v2753_v2 = vld [vmem:[#allocation7 + $0x2b8] sm:$0xff] }
 0x114   :  { %v1080_v25 = vrot.slane %v902_v19, 3  ;;  %v920_v27 = vshll.u32 %v902_v19, 16  ;;  %v964_v28 = vshrl.u32 %v3164_v20, 16  ;;  %v967_v31 = vshll.u32 %v3164_v20, 16  ;;  %1976 = vmatpush.bf16.msra.mxu2 %v2753_v2  ;;  %v2784_v2 = vld [vmem:[#allocation7 + $0x3b0] sm:$0xff] }
 0x115   :  { %v1076_v29 = vsel %vm445_vm0, %v1074_v21, %v1075_v23  ;;  %v941_v33 = vrot.slane %v3164_v20, 5  ;;  %v924_v46 = vshrl.u32 %v902_v19, 16  ;;  %v3186_v55 = vpack.c.b16 %v3179_v49, %v3179_v49 }
 0x116   :  { %1429 = vmatmul.bf16.vlgmr.msra.gmra.mxu0 %v1076_v29  ;;  %v1081_v51 = vsel %vm445_vm0, %v1066_v14, %v1080_v25  ;;  %v922_v32 = vrot.slane %v920_v27, 1  ;;  %v966_v34 = vrot.slane %v964_v28, 5  ;;  %v969_v35 = vrot.slane %v967_v31, 6  ;;  %v2751_v28 = vld [vmem:[#allocation7 + $0x2a8] sm:$0xff]  ;;  %v2750_v31 = vld [vmem:[#allocation7 + $0x2a0] sm:$0xff] }
 0x117   :  { %1368 = vmatmul.bf16.gmra.mxu1 %v1081_v51  ;;  %v942_v0 = vsel %vm316_vm1, %v939_v60, %v941_v33  ;;  %v1091_v57 = vsel %vm445_vm0, %v1080_v25, %v471_v48  ;;  %v973_v59 = vshll.u32 %v3186_v55, 16  ;;  %v1094_v22 = vrot.slane %v941_v33, 3  ;;  %v2752_v25 = vld [vmem:[#allocation7 + $0x2b0] sm:$0xff]  ;;  %v2769_v33 = vld [vmem:[#allocation7 + $0x338] sm:$0xff] }
 0x118   :  { %v923_v38 = vsel %vm281_vm2, %v918_v30, %v922_v32  ;;  %v970_v42 = vor.u32 %v969_v35, %v966_v34  ;;  %v1084_v45 = vrot.slane %v942_v0, 3  ;;  %v926_v47 = vor.u32 %v924_v46, %v922_v32  ;;  %1977 = vmatpush.bf16.msra.mxu2 %v2752_v25  ;;  %v2749_v32 = vld [vmem:[#allocation7 + $0x298] sm:$0xff]  ;;  %2020 = vmatpush.bf16.msrb.mxu0 %v2769_v33 }
 0x119   :  { %v1069_v41 = vrot.slane %v923_v38, 3  ;;  %v3195_v17 = vrot.slane %v973_v59, 6  ;;  %v979_v48 = vsel %vm357_vm4, %v977_v63, %v978_v62  ;;  %v982_v12 = vrot.slane %v3186_v55, 6  ;;  %v2748_v38 = vld [vmem:[#allocation7 + $0x290] sm:$0xff]  ;;  %v3232_v46 = vld [vmem:[%s3338_s4 + $0x1] ss:$0 sm:$0xff] }
 0x11a   :  { %v971_v14 = vsel %vm325_vm3, %v961_v11, %v970_v42  ;;  %v1085_v50 = vsel %vm445_vm0, %v1072_v8, %v1084_v45  ;;  %v931_v54 = vsel %vm281_vm2, %v926_v47, %v3077_v18  ;;  %v1095_v1 = vsel %vm445_vm0, %v1084_v45, %v1094_v22  ;;  %v3227_v45 = vld [vmem:[#allocation9 + $0x1] ss:$0 sm:$0xff]  ;;  %v2776_v22 = vld [vmem:[#allocation7 + $0x370] sm:$0xff]  ;;  %v2773_v25 = vld [vmem:[#allocation7 + $0x358] sm:$0xff] }
 0x11b   :  { %v1070_v44 = vsel %vm445_vm0, %v1068_v39, %v1069_v41  ;;  %v1086_v53 = vrot.slane %v971_v14, 3  ;;  %v1082_v60 = vrot.slane %v931_v54, 3  ;;  %v976_v36 = vsel %vm325_vm3, %v970_v42, %v3195_v17  ;;  %v2777_v54 = vld [vmem:[#allocation7 + $0x378] sm:$0xff]  ;;  %v2746_v63 = vld [vmem:[#allocation7 + $0x280] sm:$0xff] }
 0x11c   :  { %1385 = vmatmul.bf16.vlgmr.msrb.gmra.mxu2 %v1070_v44  ;;  %v1096_v3 = vrot.slane %v976_v36, 3  ;;  %v1078_v4 = vrot.slane %v979_v48, 3  ;;  %v980_v8 = vrot.slane %v3164_v20, 6  ;;  %2042 = vmatpush.bf16.msrb.mxu1 %v2777_v54 }
 0x11d   :  { %v1087_v56 = vsel %vm445_vm0, %v1075_v23, %v1086_v53  ;;  %v1083_v18 = vsel %vm445_vm0, %v1069_v41, %v1082_v60  ;;  %v1093_v37 = vsel %vm445_vm0, %v1082_v60, %v473_v43  ;;  %1978 = vmatpush.bf16.msra.mxu2 %v2751_v28 }
 0x11e   :  { %v1097_v7 = vsel %vm445_vm0, %v1086_v53, %v1096_v3  ;;  %v1079_v52 = vsel %vm445_vm0, %v1077_v5, %v1078_v4  ;;  %v981_v10 = vsel %vm357_vm4, %v978_v62, %v980_v8  ;;  %v983_v15 = vsel %vm357_vm4, %v980_v8, %v982_v12  ;;  %v2768_v53 = vld [vmem:[#allocation7 + $0x330] sm:$0xff]  ;;  %v2767_v62 = vld [vmem:[#allocation7 + $0x328] sm:$0xff]  ;;  %v2761_v5 = vld [vmem:[#allocation7 + $0x2f8] sm:$0xff] }
 0x11f   :  { %v1088_v58 = vrot.slane %v981_v10, 3  ;;  %v1098_v16 = vrot.slane %v983_v15, 3  ;;  %2021 = vmatpush.bf16.msrb.mxu0 %v2768_v53  ;;  %v2775_v8 = vld [vmem:[#allocation7 + $0x368] sm:$0xff]  ;;  %1998 = vmatpush.bf16.msrb.mxu3 %v2761_v5  ;;  %v2760_v10 = vld [vmem:[#allocation7 + $0x2f0] sm:$0xff] }
 0x120   :  { %2043 = vmatpush.bf16.msrb.mxu1 %v2776_v22  ;;  %v2780_v22 = vld [vmem:[#allocation7 + $0x390] sm:$0xff] }
 0x121   :  { %v1089_v11 = vsel %vm445_vm0, %v1078_v4, %v1088_v58  ;;  %v1099_v40 = vsel %vm445_vm0, %v1088_v58, %v1098_v16  ;;  %1979 = vmatpush.bf16.msra.mxu2 %v2750_v31  ;;  %v2765_v16 = vld [vmem:[#allocation7 + $0x318] sm:$0xff] }
 0x122   :  { %1412 = vmatmul.bf16.gmra.mxu3 %v1085_v50 }
 0x123   :  { %2022 = vmatpush.bf16.msrb.mxu0 %v2767_v62  ;;  %1999 = vmatpush.bf16.msrb.mxu3 %v2760_v10 }
 0x124   :  { %2044 = vmatpush.bf16.msrb.mxu1 %v2775_v8 }
 0x125   :  { %1980 = vmatpush.bf16.msra.mxu2 %v2749_v32 }
 0x126   :  { %1434 = vmatmul.bf16.gmra.mxu0 %v1087_v56  ;;  %v2747_v56 = vld [vmem:[#allocation7 + $0x288] sm:$0xff] }
 0x127   :  { %1372 = vmatmul.bf16.gmra.mxu1 %v1091_v57 }
 0x129   :  { %1981 = vmatpush.bf16.msra.mxu2 %v2748_v38 }
 0x12c   :  { %1390 = vmatmul.bf16.gmra.mxu2 %v1083_v18 }
 0x12d   :  { %1982 = vmatpush.bf16.msra.mxu2 %v2747_v56 }
 0x131   :  { %1983 = vmatpush.bf16.msra.mxu2 %v2746_v63 }
 0x132   :  { %1416 = vmatmul.bf16.gmra.mxu3 %v1095_v1 }
 0x136   :  { %1438 = vmatmul.bf16.gmra.mxu0 %v1097_v7 }
 0x137   :  { %1451 = vmatmul.bf16.vlgmr.msra.gmra.mxu1 %v1079_v52 }
 0x13c   :  { %1394 = vmatmul.bf16.gmra.mxu2 %v1093_v37  ;;  %v2766_v37 = vld [vmem:[#allocation7 + $0x320] sm:$0xff] }
 0x13d   :  { %2023 = vmatpush.bf16.msrb.mxu0 %v2766_v37  ;;  %v2779_v37 = vld [vmem:[#allocation7 + $0x388] sm:$0xff] }
 0x141   :  { %2024 = vmatpush.bf16.msrb.mxu0 %v2765_v16 }
 0x147   :  { %1456 = vmatmul.bf16.gmra.mxu1 %v1089_v11 }
 0x157   :  { %1460 = vmatmul.bf16.gmra.mxu1 %v1099_v40  ;;  %v2774_v40 = vld [vmem:[#allocation7 + $0x360] sm:$0xff] }
 0x158   :  { %2045 = vmatpush.bf16.msrb.mxu1 %v2774_v40 }
 0x15c   :  { %2046 = vmatpush.bf16.msrb.mxu1 %v2773_v25 }
 0x17c   :  { %v1364_v43 = vpop.f32.mrf.mxu1 }
 0x184   :  { %v1366_v6 = vpop.f32.mrf.mxu1 }
 0x193   :  { %v1430_v19 = vpop.f32.mrf.mxu0 }
 0x194   :  { %v1369_v20 = vpop.f32.mrf.mxu1 }
 0x195   :  { %v1408_v21 = vpop.f32.mrf.mxu3 }
 0x19b   :  { %v1432_v23 = vpop.f32.mrf.mxu0 }
 0x19c   :  { %v3217_v61 = vpop.f32.mrf.mxu1 }
 0x19d   :  { %v1410_v24 = vpop.f32.mrf.mxu3 }
 0x19f   :  { %v1386_v27 = vpop.f32.mrf.mxu2 }
 0x1a0   :  { %v1387_v34 = vadd.f32 %v1386_v27, %v1364_v43  ;;  %v2785_v43 = vld [vmem:[#allocation7 + $0x3b8] sm:$0xff] }
 0x1a1   :  { %2064 = vmatpush.bf16.msrb.mxu2 %v2785_v43 }
 0x1a2   :  { %v1409_v0 = vadd.f32 %v1408_v21, %v1387_v34  ;;  %v2772_v34 = vld [vmem:[#allocation7 + $0x350] sm:$0xff] }
 0x1a3   :  { %v1435_v29 = vpop.f32.mrf.mxu0  ;;  %2047 = vmatpush.bf16.msrb.mxu1 %v2772_v34 }
 0x1a4   :  { %v3219_v9 = vpop.f32.mrf.mxu1  ;;  %v1431_v13 = vadd.f32 %v1430_v19, %v1409_v0  ;;  %v2759_v19 = vld [vmem:[#allocation7 + $0x2e8] sm:$0xff]  ;;  %v2757_v0 = vld [vmem:[#allocation7 + $0x2d8] sm:$0xff] }
 0x1a5   :  { %v1413_v30 = vpop.f32.mrf.mxu3  ;;  %2065 = vmatpush.bf16.msrb.mxu2 %v2784_v2  ;;  %v2783_v29 = vld [vmem:[#allocation7 + $0x3a8] sm:$0xff]  ;;  %2000 = vmatpush.bf16.msrb.mxu3 %v2759_v19  ;;  %v2778_v19 = vld [vmem:[#allocation7 + $0x380] sm:$0xff] }
 0x1a6   :  { %v2758_v30 = vld [vmem:[#allocation7 + $0x2e0] sm:$0xff] }
 0x1a7   :  { %v1388_v51 = vpop.f32.mrf.mxu2 }
 0x1a8   :  { %v1389_v44 = vadd.f32 %v1388_v51, %v1366_v6 }
 0x1a9   :  { %2066 = vmatpush.bf16.msrb.mxu2 %v2783_v29  ;;  %2001 = vmatpush.bf16.msrb.mxu3 %v2758_v30 }
 0x1aa   :  { %v1411_v57 = vadd.f32 %v1410_v24, %v1389_v44  ;;  %v2764_v24 = vld [vmem:[#allocation7 + $0x310] sm:$0xff] }
 0x1ab   :  { %v3221_v35 = vpop.f32.mrf.mxu0  ;;  %2025 = vmatpush.bf16.msrb.mxu0 %v2764_v24 }
 0x1ac   :  { %v1375_v39 = vpop.f32.mrf.mxu1  ;;  %v1433_v3 = vadd.f32 %v1432_v23, %v1411_v57  ;;  %v2781_v57 = vld [vmem:[#allocation7 + $0x398] sm:$0xff] }
 0x1ad   :  { %v3223_v41 = vpop.f32.mrf.mxu3  ;;  %v2782_v39 = vld [vmem:[#allocation7 + $0x3a0] sm:$0xff]  ;;  %2002 = vmatpush.bf16.msrb.mxu3 %v2757_v0 }
 0x1ae   :  { %2067 = vmatpush.bf16.msrb.mxu2 %v2782_v39 }
 0x1af   :  { %v1391_v42 = vpop.f32.mrf.mxu2 }
 0x1b2   :  { %2068 = vmatpush.bf16.msrb.mxu2 %v2781_v57 }
 0x1b3   :  { %v3225_v26 = vpop.f32.mrf.mxu0 }
 0x1b4   :  { %v1452_v14 = vpop.f32.mrf.mxu1 }
 0x1b5   :  { %v1453_v47 = vadd.f32 %v1452_v14, %v1431_v13  ;;  %v3234_v50 = vpop.f32.mrf.mxu3  ;;  %v2762_v14 = vld [vmem:[#allocation7 + $0x300] sm:$0xff] }
 0x1b6   :  { %2069 = vmatpush.bf16.msrb.mxu2 %v2780_v22 }
 0x1b7   :  { %v1470_v60 = vmul.f32 %v3227_v45, %v1453_v47  ;;  %v1392_v18 = vpop.f32.mrf.mxu2  ;;  %v2771_v47 = vld [vmem:[#allocation7 + $0x348] sm:$0xff] }
 0x1b8   :  { %v1393_v20 = vadd.f32 %v1392_v18, %v3217_v61  ;;  %v2763_v61 = vld [vmem:[#allocation7 + $0x308] sm:$0xff]  ;;  %2048 = vmatpush.bf16.msrb.mxu1 %v2771_v47  ;;  %v2770_v18 = vld [vmem:[#allocation7 + $0x340] sm:$0xff] }
 0x1b9   :  { %v1479_v36 = vadd.f32 %v3232_v46, %v1470_v60  ;;  %2026 = vmatpush.bf16.msrb.mxu0 %v2763_v61 }
 0x1ba   :  { %v1415_v31 = vadd.f32 %v3223_v41, %v1393_v20  ;;  %2070 = vmatpush.bf16.msrb.mxu2 %v2779_v37 }
 0x1bb   :  { %v1483_v48 = vmax.f32 %v1479_v36, 0.0  ;;  %v1441_v1 = vpop.f32.mrf.mxu0  ;;  %v2755_v36 = vld [vmem:[#allocation7 + $0x2c8] sm:$0xff] }
 0x1bc   :  { %v1454_v4 = vpop.f32.mrf.mxu1  ;;  %v1437_v41 = vadd.f32 %v3221_v35, %v1415_v31  ;;  %2049 = vmatpush.bf16.msrb.mxu1 %v2770_v18 }
 0x1bd   :  { %1487 = vst [vmem:[#allocation2 + $0x8] sm:$0xff] %v1483_v48  ;;  %v1455_v7 = vadd.f32 %v1454_v4, %v1433_v3  ;;  %v1419_v52 = vpop.f32.mrf.mxu3  ;;  %v1500_v15 = vpack.c.bf16 %v1483_v48, %v1483_v48  ;;  %2027 = vmatpush.bf16.msrb.mxu0 %v2762_v14 }
 0x1be   :  { %v2754_v52 = vld [vmem:[#allocation7 + $0x2c0] sm:$0xff]  ;;  %2071 = vmatpush.bf16.msrb.mxu2 %v2778_v19  ;;  %v1553_v19 = vshrl.u32 %v3186_v55, 16 }
 0x1bf   :  { %v1471_v58 = vmul.f32 %v3227_v45, %v1455_v7  ;;  %v1395_v11 = vpop.f32.mrf.mxu2  ;;  %v1515_v23 = vunpack.c.l.b16 %v1500_v15 }
 0x1c0   :  { %v1396_v42 = vadd.f32 %v1395_v11, %v3219_v9  ;;  %v2756_v9 = vld [vmem:[#allocation7 + $0x2d0] sm:$0xff] }
 0x1c1   :  { %v1480_v6 = vadd.f32 %v3232_v46, %v1471_v58  ;;  %v3243_v33 = vpack.c.b16 %v1515_v23, %v3179_v49  ;;  %2003 = vmatpush.bf16.msrb.mxu3 %v2756_v9 }
 0x1c2   :  { %v1418_v35 = vadd.f32 %v3234_v50, %v1396_v42 }
 0x1c3   :  { %v1484_v21 = vmax.f32 %v1480_v6, 0.0  ;;  %v1686_v44 = vrot.slane %v3243_v33, 3  ;;  %v1528_v40 = vshll.u32 %v3243_v33, 16  ;;  %v1526_v61 = vshrl.u32 %v3243_v33, 16 }
 0x1c4   :  { %v1457_v27 = vpop.f32.mrf.mxu1  ;;  %v1440_v1 = vadd.f32 %v3225_v26, %v1418_v35 }
 0x1c5   :  { %1488 = vst [vmem:[#allocation2 + $0x10] sm:$0xff] %v1484_v21  ;;  %v1501_v28 = vpack.c.bf16 %v1484_v21, %v1484_v21  ;;  %2004 = vmatpush.bf16.msrb.mxu3 %v2755_v36  ;;  %v1530_v30 = vrot.slane %v1528_v40, 1 }
 0x1c7   :  { %v1397_v51 = vpop.f32.mrf.mxu2  ;;  %v1516_v32 = vunpack.c.l.b16 %v1501_v28  ;;  %v1531_v14 = vor.u32 %v1530_v30, %v1526_v61 }
 0x1c9   :  { %v3246_v38 = vpack.c.b16 %v3179_v49, %v1516_v32  ;;  %v3258_v63 = vpack.c.b16 %v1516_v32, %v1515_v23  ;;  %2005 = vmatpush.bf16.msrb.mxu3 %v2754_v52  ;;  %v1551_v52 = vrot.slane %v973_v59, 1 }
 0x1cb   :  { %v1687_v13 = vrot.slane %v3246_v38, 3  ;;  %v1568_v5 = vshrl.u32 %v3258_v63, 16  ;;  %v1571_v7 = vshll.u32 %v3258_v63, 16  ;;  %v1559_v11 = vrot.slane %v3258_v63, 5 }
 0x1cc   :  { %v1458_v53 = vpop.f32.mrf.mxu1  ;;  %v1533_v20 = vshll.u32 %v3246_v38, 16  ;;  %v1537_v47 = vshrl.u32 %v3246_v38, 16 }
 0x1cd   :  { %v1459_v54 = vadd.f32 %v1458_v53, %v1437_v41  ;;  %v1688_v56 = vsel %vm445_vm0, %v1686_v44, %v1687_v13  ;;  %v1570_v15 = vrot.slane %v1568_v5, 5  ;;  %v1573_v16 = vrot.slane %v1571_v7, 6 }
 0x1ce   :  { %1984 = vmatmul.bf16.vlgmr.msra.gmra.mxu2 %v1688_v56  ;;  %v1692_v27 = vrot.slane %v1559_v11, 3  ;;  %v1535_v34 = vrot.slane %v1533_v20, 1 }
 0x1cf   :  { %v1472_v60 = vmul.f32 %v3227_v45, %v1459_v54  ;;  %v1574_v29 = vor.u32 %v1573_v16, %v1570_v15 }
 0x1d0   :  { %v1536_v33 = vsel %vm281_vm2, %v1531_v14, %v1535_v34  ;;  %v1539_v9 = vor.u32 %v1537_v47, %v1535_v34 }
 0x1d1   :  { %v1481_v62 = vadd.f32 %v3232_v46, %v1472_v60  ;;  %v1695_v41 = vrot.slane %v1574_v29, 3 }
 0x1d3   :  { %v1485_v48 = vmax.f32 %v1481_v62, 0.0 }
 0x1d4   :  { %v1461_v3 = vpop.f32.mrf.mxu1 }
 0x1d5   :  { %1489 = vst [vmem:[#allocation2 + $0x20] sm:$0xff] %v1485_v48  ;;  %v1462_v50 = vadd.f32 %v1461_v3, %v1440_v1  ;;  %v1503_v4 = vpack.c.bf16 %v1485_v48, %v1485_v48  ;;  %v1689_v48 = vrot.slane %v1536_v33, 3 }
 0x1d7   :  { %v1473_v8 = vmul.f32 %v3227_v45, %v1462_v50  ;;  %v1518_v10 = vunpack.c.l.b16 %v1503_v4 }
 0x1d9   :  { %v1482_v58 = vadd.f32 %v3232_v46, %v1473_v8  ;;  %v3266_v26 = vpack.c.b16 %v1518_v10, %v3179_v49 }
 0x1db   :  { %v1486_v43 = vmax.f32 %v1482_v58, 0.0  ;;  %v1560_v6 = vrot.slane %v3266_v26, 5  ;;  %v1576_v2 = vshrl.u32 %v3266_v26, 16  ;;  %v1579_v45 = vshll.u32 %v3266_v26, 16 }
 0x1dc   :  { %v1463_v46 = vpop.f32.mrf.mxu1 }
 0x1dd   :  { %1490 = vst [vmem:[#allocation2 + $0x28] sm:$0xff] %v1486_v43  ;;  %v1561_v21 = vsel %vm316_vm1, %v1559_v11, %v1560_v6  ;;  %v1578_v23 = vrot.slane %v1576_v2, 5  ;;  %v1581_v24 = vrot.slane %v1579_v45, 6  ;;  %v1504_v25 = vpack.c.bf16 %v1486_v43, %v1486_v43 }
 0x1de   :  { %v1693_v28 = vrot.slane %v1561_v21, 3  ;;  %v1599_v43 = vrot.slane %v3266_v26, 6 }
 0x1df   :  { %v1582_v31 = vor.u32 %v1581_v24, %v1578_v23  ;;  %v1519_v51 = vunpack.c.l.b16 %v1504_v25  ;;  %v1555_v23 = vor.u32 %v1553_v19, %v1551_v52 }
 0x1e0   :  { %v1694_v32 = vsel %vm445_vm0, %v1692_v27, %v1693_v28 }
 0x1e1   :  { %2028 = vmatmul.bf16.vlgmr.msrb.gmra.mxu0 %v1694_v32  ;;  %v1583_v39 = vsel %vm325_vm3, %v1574_v29, %v1582_v31  ;;  %v1523_v0 = vpack.c.b16 %v1519_v51, %v1518_v10  ;;  %v3279_v42 = vpack.c.b16 %v3179_v49, %v1519_v51  ;;  %v1711_v10 = vrot.slane %v3186_v55, 3 }
 0x1e2   :  { %v1696_v44 = vrot.slane %v1583_v39, 3 }
 0x1e3   :  { %v1701_v53 = vrot.slane %v1523_v0, 3  ;;  %v1541_v54 = vshll.u32 %v1523_v0, 16  ;;  %v1585_v56 = vshrl.u32 %v3279_v42, 16  ;;  %v1588_v35 = vshll.u32 %v3279_v42, 16 }
 0x1e4   :  { %v1697_v57 = vsel %vm445_vm0, %v1695_v41, %v1696_v44  ;;  %v1562_v18 = vrot.slane %v3279_v42, 5  ;;  %v1601_v27 = vrot.slane %v3279_v42, 6 }
 0x1e5   :  { %2050 = vmatmul.bf16.vlgmr.msrb.gmra.mxu1 %v1697_v57  ;;  %v1702_v49 = vsel %vm445_vm0, %v1687_v13, %v1701_v53  ;;  %v1543_v60 = vrot.slane %v1541_v54, 1  ;;  %v1587_v62 = vrot.slane %v1585_v56, 5  ;;  %v1590_v22 = vrot.slane %v1588_v35, 6 }
 0x1e6   :  { %1989 = vmatmul.bf16.gmra.mxu2 %v1702_v49  ;;  %v1563_v3 = vsel %vm316_vm1, %v1560_v6, %v1562_v18  ;;  %v1545_v13 = vshrl.u32 %v1523_v0, 16  ;;  %v1712_v15 = vsel %vm445_vm0, %v1701_v53, %v1711_v10  ;;  %v1715_v59 = vrot.slane %v1562_v18, 3 }
 0x1e7   :  { %v1544_v36 = vsel %vm281_vm2, %v1539_v9, %v1543_v60  ;;  %v1591_v50 = vor.u32 %v1590_v22, %v1587_v62  ;;  %v1705_v5 = vrot.slane %v1563_v3, 3  ;;  %v1598_v6 = vrot.slane %v3258_v63, 6 }
 0x1e8   :  { %v1690_v1 = vrot.slane %v1544_v36, 3  ;;  %v1547_v7 = vor.u32 %v1545_v13, %v1543_v60  ;;  %v1713_v63 = vrot.slane %v1555_v23, 3 }
 0x1e9   :  { %v1592_v38 = vsel %vm325_vm3, %v1582_v31, %v1591_v50  ;;  %v1706_v37 = vsel %vm445_vm0, %v1693_v28, %v1705_v5  ;;  %v1597_v2 = vsel %vm325_vm3, %v1591_v50, %v3195_v17  ;;  %v1600_v45 = vsel %vm357_vm4, %v1598_v6, %v1599_v43 }
 0x1ea   :  { %v1691_v4 = vsel %vm445_vm0, %v1689_v48, %v1690_v1  ;;  %v1707_v8 = vrot.slane %v1592_v38, 3  ;;  %v1552_v58 = vsel %vm281_vm2, %v1547_v7, %v1551_v52  ;;  %v1716_v46 = vsel %vm445_vm0, %v1705_v5, %v1715_v59 }
 0x1eb   :  { %2006 = vmatmul.bf16.vlgmr.msrb.gmra.mxu3 %v1691_v4  ;;  %v1703_v16 = vrot.slane %v1552_v58, 3  ;;  %v1717_v20 = vrot.slane %v1597_v2, 3  ;;  %v1699_v21 = vrot.slane %v1600_v45, 3  ;;  %v1698_v24 = vrot.slane %v1598_v6, 3  ;;  %v2810_v4 = vld [vmem:[%s3338_s4 + $0x2] ss:$0 sm:$0xff] }
 0x1ec   :  { %v1708_v11 = vsel %vm445_vm0, %v1696_v44, %v1707_v8  ;;  %v1602_v28 = vsel %vm357_vm4, %v1599_v43, %v1601_v27  ;;  %v1604_v31 = vsel %vm357_vm4, %v1601_v27, %v982_v12 }
 0x1ed   :  { %v1704_v40 = vsel %vm445_vm0, %v1690_v1, %v1703_v16  ;;  %v1718_v26 = vsel %vm445_vm0, %v1707_v8, %v1717_v20  ;;  %v1700_v25 = vsel %vm445_vm0, %v1698_v24, %v1699_v21  ;;  %v1714_v17 = vsel %vm445_vm0, %v1703_v16, %v1713_v63  ;;  %v2809_v1 = vld [vmem:[#allocation9 + $0x2] ss:$0 sm:$0xff] }
 0x1ee   :  { %v1709_v29 = vrot.slane %v1602_v28, 3  ;;  %v1719_v51 = vrot.slane %v1604_v31, 3 }
 0x1f0   :  { %v1710_v30 = vsel %vm445_vm0, %v1699_v21, %v1709_v29  ;;  %v1720_v32 = vsel %vm445_vm0, %v1709_v29, %v1719_v51 }
 0x1f1   :  { %2033 = vmatmul.bf16.gmra.mxu0 %v1706_v37 }
 0x1f5   :  { %2055 = vmatmul.bf16.gmra.mxu1 %v1708_v11 }
 0x1f6   :  { %1993 = vmatmul.bf16.gmra.mxu2 %v1712_v15 }
 0x1fb   :  { %2011 = vmatmul.bf16.gmra.mxu3 %v1704_v40 }
 0x201   :  { %2037 = vmatmul.bf16.gmra.mxu0 %v1716_v46 }
 0x205   :  { %2059 = vmatmul.bf16.gmra.mxu1 %v1718_v26 }
 0x206   :  { %2072 = vmatmul.bf16.vlgmr.msrb.gmra.mxu2 %v1700_v25 }
 0x20b   :  { %2015 = vmatmul.bf16.gmra.mxu3 %v1714_v17 }
 0x216   :  { %2077 = vmatmul.bf16.gmra.mxu2 %v1710_v30 }
 0x226   :  { %2081 = vmatmul.bf16.gmra.mxu2 %v1720_v32 }
 0x251   :  { %v1985_v61 = vpop.f32.mrf.mxu2 }
 0x259   :  { %v1987_v39 = vpop.f32.mrf.mxu2 }
 0x25e   :  { %v2029_v34 = vpop.f32.mrf.mxu0 }
 0x262   :  { %v2051_v0 = vpop.f32.mrf.mxu1 }
 0x266   :  { %v2031_v42 = vpop.f32.mrf.mxu0 }
 0x269   :  { %v1990_v41 = vpop.f32.mrf.mxu2 }
 0x26a   :  { %v2053_v44 = vpop.f32.mrf.mxu1 }
 0x26e   :  { %v2007_v14 = vpop.f32.mrf.mxu3  ;;  %v2034_v47 = vpop.f32.mrf.mxu0 }
 0x26f   :  { %v2008_v35 = vadd.f32 %v2007_v14, %v1985_v61 }
 0x271   :  { %v1991_v53 = vpop.f32.mrf.mxu2  ;;  %v2030_v18 = vadd.f32 %v2029_v34, %v2008_v35 }
 0x272   :  { %v2056_v54 = vpop.f32.mrf.mxu1 }
 0x273   :  { %v2052_v48 = vadd.f32 %v2051_v0, %v2030_v18 }
 0x276   :  { %v2009_v56 = vpop.f32.mrf.mxu3  ;;  %v2035_v57 = vpop.f32.mrf.mxu0 }
 0x277   :  { %v2010_v36 = vadd.f32 %v2009_v56, %v1987_v39 }
 0x279   :  { %v1994_v55 = vpop.f32.mrf.mxu2  ;;  %v2032_v38 = vadd.f32 %v2031_v42, %v2010_v36 }
 0x27a   :  { %v2057_v33 = vpop.f32.mrf.mxu1 }
 0x27b   :  { %v2054_v8 = vadd.f32 %v2053_v44, %v2032_v38 }
 0x27e   :  { %v2012_v12 = vpop.f32.mrf.mxu3  ;;  %v2038_v9 = vpop.f32.mrf.mxu0 }
 0x281   :  { %v1996_v49 = vpop.f32.mrf.mxu2 }
 0x282   :  { %v2060_v60 = vpop.f32.mrf.mxu1 }
 0x286   :  { %v2013_v62 = vpop.f32.mrf.mxu3  ;;  %v2040_v22 = vpop.f32.mrf.mxu0 }
 0x287   :  { %v2014_v40 = vadd.f32 %v2013_v62, %v1991_v53 }
 0x289   :  { %v2073_v3 = vpop.f32.mrf.mxu2  ;;  %v2036_v6 = vadd.f32 %v2035_v57, %v2014_v40 }
 0x28a   :  { %v2074_v50 = vadd.f32 %v2073_v3, %v2052_v48  ;;  %v2062_v5 = vpop.f32.mrf.mxu1 }
 0x28b   :  { %v2058_v45 = vadd.f32 %v2057_v33, %v2036_v6 }
 0x28c   :  { %v2091_v13 = vmul.f32 %v2809_v1, %v2074_v50 }
 0x28e   :  { %v2100_v7 = vadd.f32 %v2810_v4, %v2091_v13  ;;  %v2016_v52 = vpop.f32.mrf.mxu3 }
 0x28f   :  { %v2017_v2 = vadd.f32 %v2016_v52, %v1994_v55 }
 0x290   :  { %v2104_v37 = vmax.f32 %v2100_v7, 0.0 }
 0x291   :  { %v2075_v10 = vpop.f32.mrf.mxu2  ;;  %v2039_v20 = vadd.f32 %v2038_v9, %v2017_v2 }
 0x292   :  { %2108 = vst [vmem:[%s3339_s5] sm:$0xff] %v2104_v37  ;;  %v2076_v58 = vadd.f32 %v2075_v10, %v2054_v8 }
 0x293   :  { %v2061_v26 = vadd.f32 %v2060_v60, %v2039_v20 }
 0x294   :  { %v2092_v11 = vmul.f32 %v2809_v1, %v2076_v58 }
 0x296   :  { %v2101_v15 = vadd.f32 %v2810_v4, %v2092_v11  ;;  %v2018_v16 = vpop.f32.mrf.mxu3 }
 0x298   :  { %v2105_v43 = vmax.f32 %v2101_v15, 0.0 }
 0x299   :  { %v2078_v59 = vpop.f32.mrf.mxu2 }
 0x29a   :  { %2109 = vst [vmem:[%s3339_s5 + $0x8] sm:$0xff] %v2105_v43 }
 0x2a1   :  { %v2079_v19 = vpop.f32.mrf.mxu2 }
 0x2a2   :  { %v2080_v46 = vadd.f32 %v2079_v19, %v2058_v45 }
 0x2a4   :  { %v2093_v21 = vmul.f32 %v2809_v1, %v2080_v46 }
 0x2a6   :  { %v2102_v23 = vadd.f32 %v2810_v4, %v2093_v21 }
 0x2a8   :  { %v2106_v24 = vmax.f32 %v2102_v23, 0.0 }
 0x2a9   :  { %v2082_v25 = vpop.f32.mrf.mxu2 }
 0x2aa   :  { %2664 = vst [vmem:[%s3339_s5 + $0x10] sm:$0xff] %v2106_v24  ;;  %v2083_v63 = vadd.f32 %v2082_v25, %v2061_v26 }
 0x2ac   :  { %v2094_v17 = vmul.f32 %v2809_v1, %v2083_v63 }
 0x2ae   :  { %v2103_v27 = vadd.f32 %v2810_v4, %v2094_v17 }
 0x2b0   :  { %v2107_v28 = vmax.f32 %v2103_v27, 0.0 }
 0x2b1   :  { %v2084_v29 = vpop.f32.mrf.mxu2 }
 0x2b2   :  { %2665 = vst [vmem:[%s3339_s5 + $0x18] sm:$0xff] %v2107_v28 }
 0x2b3   :  { %2117 = vsyncpa [#allocation6], 1 }
 0x2b4   :  { %2118 = vsyncpa [#allocation8], 1 }

</bundles_post_ra>
